<compile_context>
chip_gen: v6e
topology: v6e:2x2x1
jax: 0.10.0
libtpu: 0.0.40
codegen_flags: <defaults>
</compile_context>

<pallas_src>
from functools import partial

import jax
import jax.numpy as jnp
from jax.experimental import pallas as pl
from jax.experimental.pallas import tpu as pltpu


def _round_up(n, m):
    return ((n + m - 1) // m) * m


def _mlp_kernel(x_ref, w1_ref, b1_ref, w2_ref, b2_ref, o_ref):
    # Layer 1 on the MXU (lane-dense: hidden padded to 128), f32 accumulation.
    h = jnp.dot(x_ref[...], w1_ref[...], preferred_element_type=jnp.float32)
    h = jnp.tanh(h + b1_ref[...])  # f32 bias add + EUP tanh
    # Layer 2 (lane-dense: classes padded to 128).  The cast of h to the weight
    # dtype is the f32->bf16 cast when running the bf16 fast path; no-op in f32.
    y = jnp.dot(h.astype(w2_ref.dtype), w2_ref[...],
                preferred_element_type=jnp.float32)
    o_ref[...] = (y + b2_ref[...]).astype(o_ref.dtype)


def prepare_params(w1, b1, w2, b2, *, compute_dtype=jnp.float32):
    """One-time (init-time) padding / cast of the weights.

    w1: [num_pixels, hidden]   (transposed PyTorch weight)
    b1: [hidden]
    w2: [hidden, num_classes]  (transposed PyTorch weight)
    b2: [num_classes]

    Returns (w1_p, b1_p, w2_p, b2_p) with hidden/classes zero-padded to
    multiples of 128.  Matmul operands take `compute_dtype`; biases stay f32.
    """
    hidden = w1.shape[1]
    num_classes = w2.shape[1]
    hid_p = _round_up(hidden, 128)
    out_p = _round_up(num_classes, 128)
    w1_p = jnp.pad(w1, ((0, 0), (0, hid_p - hidden))).astype(compute_dtype)
    b1_p = jnp.pad(b1, (0, hid_p - hidden)).reshape(1, hid_p).astype(jnp.float32)
    w2_p = jnp.pad(w2, ((0, hid_p - hidden), (0, out_p - num_classes))).astype(compute_dtype)
    b2_p = jnp.pad(b2, (0, out_p - num_classes)).reshape(1, out_p).astype(jnp.float32)
    return w1_p, b1_p, w2_p, b2_p


@partial(jax.jit, static_argnames=("num_classes", "tm_max"))
def best_performing_model_forward(x, w1_p, b1_p, w2_p, b2_p, *,
                                  num_classes, tm_max=1024):
    """Forward pass.  x: [B, num_pixels] f32.  Returns [B, num_classes] f32."""
    B, num_pixels = x.shape
    hid_p = w1_p.shape[1]
    out_p = w2_p.shape[1]

    # Matmul operands in the compute dtype (bf16 fast path or exact f32).
    x = x.astype(w1_p.dtype)

    # Pad the batch only to a sublane multiple (<= 7 extra rows), never to tm.
    b8 = _round_up(B, 8)
    if b8 != B:
        x = jnp.pad(x, ((0, b8 - B), (0, 0)))

    # Batch tile: as large as possible under tm_max, but split into >= 2 grid
    # steps when the batch is big enough so both v7x TensorCores get work.
    # Ragged last block is handled by Pallas (masked output writes).
    tm = min(tm_max, b8)
    if b8 >= 1024:
        tm = min(tm, _round_up(pl.cdiv(b8, 2), 8))
    grid = (pl.cdiv(b8, tm),)

    itemsize = jnp.dtype(w1_p.dtype).itemsize
    cost = pl.CostEstimate(
        flops=2 * b8 * num_pixels * hid_p + 2 * b8 * hid_p * out_p,
        transcendentals=b8 * hid_p,
        bytes_accessed=(b8 * num_pixels * itemsize        # x stream
                        + num_pixels * hid_p * itemsize   # W1 (one DMA, resident)
                        + hid_p * out_p * itemsize        # W2 (resident)
                        + 4 * (hid_p + out_p)             # biases (f32)
                        + 4 * b8 * out_p),                # f32 output
    )

    out = pl.pallas_call(
        _mlp_kernel,
        out_shape=jax.ShapeDtypeStruct((b8, out_p), jnp.float32),
        grid_spec=pltpu.PrefetchScalarGridSpec(
            num_scalar_prefetch=0,
            grid=grid,
            in_specs=[
                pl.BlockSpec((tm, num_pixels), lambda i: (i, 0)),     # x: streamed per tile
                pl.BlockSpec((num_pixels, hid_p), lambda i: (0, 0)),  # W1: resident
                pl.BlockSpec((1, hid_p), lambda i: (0, 0)),           # b1: resident
                pl.BlockSpec((hid_p, out_p), lambda i: (0, 0)),       # W2: resident
                pl.BlockSpec((1, out_p), lambda i: (0, 0)),           # b2: resident
            ],
            out_specs=pl.BlockSpec((tm, out_p), lambda i: (i, 0)),
        ),
        compiler_params=pltpu.CompilerParams(
            dimension_semantics=("parallel",),   # batch axis: megacore-shardable on v7x
            vmem_limit_bytes=56 << 20,           # < v7x 64 MiB/TC; big raise vs v5e/v6e defaults
        ),
        cost_estimate=cost,
    )(x, w1_p, b1_p, w2_p, b2_p)

    return out[:B, :num_classes]


def _ref_forward(x, w1, b1, w2, b2):
    # Pure-JAX reference matching PyTorch semantics.
    return jnp.tanh(x @ w1 + b1) @ w2 + b2


if __name__ == "__main__":
    num_pixels = 3072
    num_classes = 10
    hidden = 100
    batch = 2

    key = jax.random.PRNGKey(0)
    kx, kw1, kb1, kw2, kb2, kx2 = jax.random.split(key, 6)

    # Deterministic init mimicking nn.Linear's uniform(-1/sqrt(fan_in), ...).
    bound1 = 1.0 / jnp.sqrt(jnp.float32(num_pixels))
    bound2 = 1.0 / jnp.sqrt(jnp.float32(hidden))

    x = jax.random.normal(kx, (batch, num_pixels), dtype=jnp.float32)
    w1 = jax.random.uniform(kw1, (num_pixels, hidden), jnp.float32, -bound1, bound1)
    b1 = jax.random.uniform(kb1, (hidden,), jnp.float32, -bound1, bound1)
    w2 = jax.random.uniform(kw2, (hidden, num_classes), jnp.float32, -bound2, bound2)
    b2 = jax.random.uniform(kb2, (num_classes,), jnp.float32, -bound2, bound2)

    # ---- exact f32 path (default): strict reference check -------------------
    params_f32 = prepare_params(w1, b1, w2, b2, compute_dtype=jnp.float32)
    y = best_performing_model_forward(x, *params_f32, num_classes=num_classes)
    y = jax.block_until_ready(y)
    y_ref = _ref_forward(x, w1, b1, w2, b2)
    assert y.shape == (batch, num_classes)
    assert y.dtype == jnp.float32
    assert jnp.allclose(y, y_ref, atol=1e-4, rtol=1e-4), "f32 mismatch vs reference"

    # ---- bf16 fast path: multi-step ragged grid + bf16 MXU inputs -----------
    # (small tm_max forces a 3-step grid with a ragged last block; tolerance is
    # loosened to cover bf16 input rounding over the K=3072 contraction.)
    batch2 = 300
    x2 = jax.random.normal(kx2, (batch2, num_pixels), dtype=jnp.float32)
    params_bf16 = prepare_params(w1, b1, w2, b2, compute_dtype=jnp.bfloat16)
    y2 = best_performing_model_forward(x2, *params_bf16,
                                       num_classes=num_classes, tm_max=128)
    y2 = jax.block_until_ready(y2)
    y2_ref = _ref_forward(x2, w1, b1, w2, b2)
    assert y2.shape == (batch2, num_classes)
    assert y2.dtype == jnp.float32
    assert jnp.allclose(y2, y2_ref, atol=5e-2, rtol=5e-2), "bf16 mismatch vs reference"

    print("KERNEL_OK")
</pallas_src>

<mosaic_0001>
module attributes {stable_mosaic.version = 11 : i64} {
  func.func @_mlp_kernel(%arg0: i32, %arg1: memref<8x3072xf32, #tpu.memory_space<vmem>>, %arg2: memref<3072x128xf32, #tpu.memory_space<vmem>>, %arg3: memref<1x128xf32, #tpu.memory_space<vmem>>, %arg4: memref<128x128xf32, #tpu.memory_space<vmem>>, %arg5: memref<1x128xf32, #tpu.memory_space<vmem>>, %arg6: memref<8x128xf32, #tpu.memory_space<vmem>>) attributes {dimension_semantics = [#tpu.dimension_semantics<parallel>], iteration_bounds = array<i64: 1>, scalar_prefetch = 0 : i64, scratch_operands = 0 : i64, tpu.core_type = #tpu.core_type<tc>, window_params = [{transform_indices = @transform_0, window_bounds = array<i64: 8, 3072>}, {pipeline_mode = #tpu.pipeline_mode<synchronous>, transform_indices = @transform_1, window_bounds = array<i64: 3072, 128>}, {pipeline_mode = #tpu.pipeline_mode<synchronous>, transform_indices = @transform_2, window_bounds = array<i64: 1, 128>}, {pipeline_mode = #tpu.pipeline_mode<synchronous>, transform_indices = @transform_3, window_bounds = array<i64: 128, 128>}, {pipeline_mode = #tpu.pipeline_mode<synchronous>, transform_indices = @transform_4, window_bounds = array<i64: 1, 128>}, {transform_indices = @transform_5, window_bounds = array<i64: 8, 128>}]} {
    %c0 = arith.constant 0 : index
    %c0_0 = arith.constant 0 : index
    %0 = vector.load %arg1[%c0, %c0_0] : memref<8x3072xf32, #tpu.memory_space<vmem>>, vector<8x3072xf32>
    %c0_1 = arith.constant 0 : index
    %c0_2 = arith.constant 0 : index
    %1 = vector.load %arg2[%c0_1, %c0_2] : memref<3072x128xf32, #tpu.memory_space<vmem>>, vector<3072x128xf32>
    %cst = arith.constant dense<0.000000e+00> : vector<8x128xf32>
    %2 = tpu.matmul %0, %1, %cst {dimension_numbers = #tpu.dot_dimension_numbers<[1], [0], [0], [1], [0, 0, 1, 1], [], []>} : vector<8x3072xf32>, vector<3072x128xf32>, vector<8x128xf32> -> vector<8x128xf32>
    %c0_3 = arith.constant 0 : index
    %c0_4 = arith.constant 0 : index
    %3 = vector.load %arg3[%c0_3, %c0_4] : memref<1x128xf32, #tpu.memory_space<vmem>>, vector<1x128xf32>
    %4 = vector.broadcast %3 : vector<1x128xf32> to vector<8x128xf32>
    %5 = arith.addf %2, %4 : vector<8x128xf32>
    %6 = math.tanh %5 : vector<8x128xf32>
    %c0_5 = arith.constant 0 : index
    %c0_6 = arith.constant 0 : index
    %7 = vector.load %arg4[%c0_5, %c0_6] : memref<128x128xf32, #tpu.memory_space<vmem>>, vector<128x128xf32>
    %cst_7 = arith.constant dense<0.000000e+00> : vector<8x128xf32>
    %8 = tpu.matmul %6, %7, %cst_7 {dimension_numbers = #tpu.dot_dimension_numbers<[1], [0], [0], [1], [0, 0, 1, 1], [], []>} : vector<8x128xf32>, vector<128x128xf32>, vector<8x128xf32> -> vector<8x128xf32>
    %c0_8 = arith.constant 0 : index
    %c0_9 = arith.constant 0 : index
    %9 = vector.load %arg5[%c0_8, %c0_9] : memref<1x128xf32, #tpu.memory_space<vmem>>, vector<1x128xf32>
    %10 = vector.broadcast %9 : vector<1x128xf32> to vector<8x128xf32>
    %11 = arith.addf %8, %10 : vector<8x128xf32>
    %c0_10 = arith.constant 0 : index
    %c0_11 = arith.constant 0 : index
    %12 = vector.load %arg6[%c0_10, %c0_11] : memref<8x128xf32, #tpu.memory_space<vmem>>, vector<8x128xf32>
    tpu.vector_store %arg6[%c0_10, %c0_11], %11 {strides = array<i32>} : memref<8x128xf32, #tpu.memory_space<vmem>>, vector<8x128xf32>,
    return
  }
  func.func @transform_0(%arg0: i32) -> (i32, i32) {
    %c0_i32 = arith.constant 0 : i32
    %c0_i32_0 = arith.constant 0 : i32
    return %arg0, %c0_i32 : i32, i32
  }
  func.func @transform_1(%arg0: i32) -> (i32, i32) {
    %c0_i32 = arith.constant 0 : i32
    %c0_i32_0 = arith.constant 0 : i32
    %c0_i32_1 = arith.constant 0 : i32
    return %c0_i32, %c0_i32_0 : i32, i32
  }
  func.func @transform_2(%arg0: i32) -> (i32, i32) {
    %c0_i32 = arith.constant 0 : i32
    %c0_i32_0 = arith.constant 0 : i32
    %c0_i32_1 = arith.constant 0 : i32
    return %c0_i32, %c0_i32_0 : i32, i32
  }
  func.func @transform_3(%arg0: i32) -> (i32, i32) {
    %c0_i32 = arith.constant 0 : i32
    %c0_i32_0 = arith.constant 0 : i32
    %c0_i32_1 = arith.constant 0 : i32
    return %c0_i32, %c0_i32_0 : i32, i32
  }
  func.func @transform_4(%arg0: i32) -> (i32, i32) {
    %c0_i32 = arith.constant 0 : i32
    %c0_i32_0 = arith.constant 0 : i32
    %c0_i32_1 = arith.constant 0 : i32
    return %c0_i32, %c0_i32_0 : i32, i32
  }
  func.func @transform_5(%arg0: i32) -> (i32, i32) {
    %c0_i32 = arith.constant 0 : i32
    %c0_i32_0 = arith.constant 0 : i32
    return %arg0, %c0_i32 : i32, i32
  }
}

</mosaic_0001>

<bundles_post_ra>
// kernel: best_performing_model_forward.1
= control target key start
LH: loop header
LB: loop body
LE: loop exit
PB: predicated region body
PF: predicated region fallthrough
CT: control target
= control target key end

     0   :  { %10 = vsyncpa [#allocation3], 0  ;;  %s2123_s0 = inlined_call_operand.vmem [shape: f32[8,3072], index: 0, kind: input, shape index: {}]   ;;  %s2124_s1 = inlined_call_operand.hbm [shape: f32[3072,128], index: 1, kind: input, shape index: {}]   ;;  %s2125_s2 = inlined_call_operand.hbm [shape: f32[1,128], index: 2, kind: input, shape index: {}]   ;;  %s2126_s3 = inlined_call_operand.hbm [shape: f32[128,128], index: 3, kind: input, shape index: {}]   ;;  %s2127_s4 = inlined_call_operand.hbm [shape: f32[1,128], index: 4, kind: input, shape index: {}]   ;;  %s2128_s5 = inlined_call_operand.vmem [shape: f32[8,128], index: 5, kind: output, shape index: {}]  }
   0x1   :  { %11 = vsyncpa [#allocation5], 0 }
   0x2   :  { %12 = vsyncpa [#allocation8], 0  ;;  %s1998_s18 = smov [#allocation4]   ;;  %s1999_s20 = smov [#allocation2]  }
   0x3   :  { %s33_s19 = sshll.u32 %s1998_s18, 4  ;;  %s20_s21 = sshll.u32 %s1999_s20, 4  ;;  %s34_s19 = int_to_ptr.vmem [resolvable:$true] %s33_s19  ;;  %s21_s21 = int_to_ptr.vmem [resolvable:$true] %s20_s21 }
   0x4   :  { %s1920_s22 = scalar_lea.vmem %s34_s19, 16  ;;  %s1924_s23 = scalar_lea.vmem %s34_s19, 32 }
   0x5   :  { %p1921_p0 = scmp.ne.s32.totalorder %s34_s19, %s1920_s22  ;;  %p1925_p1 = scmp.lt.s32.totalorder %s34_s19, %s34_s19 }
   0x6   :  { %p1926_p2 = scmp.lt.s32.totalorder %s1924_s23, %s1920_s22 }
   0x8   :  { %p1927_p3 = por %p1926_p2, %p1925_p1 }
   0xa   :  { %p1928_p4 = pnand %p1927_p3, %p1921_p0 }
   0xc   :  { %1931 = shalt.err (!%p1928_p4)
}
   0xd   :  { %36 = dma.hbm_to_vmem [thread:$0]  %s2125_s2, 16, %s34_s19, [#allocation5]  }
   0xe   :  { %s1940_s26 = scalar_lea.vmem %s21_s21, 49152  ;;  %p1945_p6 = scmp.lt.s32.totalorder %s21_s21, %s21_s21 }
   0xf   :  { %p1941_p5 = scmp.ne.s32.totalorder %s21_s21, %s1940_s26  ;;  %p1946_p7 = scmp.lt.s32.totalorder %s1940_s26, %s1940_s26 }
  0x11   :  { %p1947_p8 = por %p1946_p7, %p1945_p6 }
  0x13   :  { %p1948_p9 = pnand %p1947_p8, %p1941_p5 }
  0x15   :  { %1951 = shalt.err (!%p1948_p9)
}
  0x16   :  { %s2000_s27 = smov 128   ;;  %s2001_s28 = smov 8  }
  0x17   :  { %26 = dma.hbm_to_vmem [thread:$0]  %s2124_s1, 49152, %s21_s21, [#allocation3], %s2000_s27, %s2000_s27, %s2001_s28  }
  0x18   :  { %s2002_s6 = smov [#allocation6]   ;;  %s2003_s8 = smov [#allocation7]  }
  0x19   :  { %s42_s7 = sshll.u32 %s2002_s6, 4  ;;  %s55_s9 = sshll.u32 %s2003_s8, 4  ;;  %s43_s7 = int_to_ptr.vmem [resolvable:$true] %s42_s7  ;;  %s56_s9 = int_to_ptr.vmem [resolvable:$true] %s55_s9 }
  0x1a   :  { %s1960_s2 = scalar_lea.vmem %s43_s7, 2048  ;;  %p1965_p11 = scmp.lt.s32.totalorder %s43_s7, %s43_s7 }
  0x1b   :  { %p1961_p10 = scmp.ne.s32.totalorder %s43_s7, %s1960_s2  ;;  %p1966_p12 = scmp.lt.s32.totalorder %s1960_s2, %s1960_s2 }
  0x1d   :  { %p1967_p13 = por %p1966_p12, %p1965_p11 }
  0x1f   :  { %p1968_p0 = pnand %p1967_p13, %p1961_p10 }
  0x21   :  { %1971 = shalt.err (!%p1968_p0)
}
  0x22   :  { %48 = dma.hbm_to_vmem [thread:$0]  %s2126_s3, 2048, %s43_s7, [#allocation5], %s2000_s27, %s2000_s27, %s2001_s28  }
  0x23   :  { %s1980_s12 = scalar_lea.vmem %s56_s9, 16  ;;  %s1984_s1 = scalar_lea.vmem %s56_s9, 32 }
  0x24   :  { %p1981_p1 = scmp.ne.s32.totalorder %s56_s9, %s1980_s12  ;;  %p1985_p2 = scmp.lt.s32.totalorder %s56_s9, %s56_s9 }
  0x25   :  { %p1986_p3 = scmp.lt.s32.totalorder %s1984_s1, %s1980_s12 }
  0x27   :  { %p1987_p4 = por %p1986_p3, %p1985_p2 }
  0x29   :  { %p1988_p5 = pnand %p1987_p4, %p1981_p1 }
  0x2b   :  { %1991 = shalt.err (!%p1988_p5)
}
  0x2c   :  { %58 = dma.hbm_to_vmem [thread:$0]  %s2127_s4, 16, %s56_s9, [#allocation8]  }
  0x2d   :  { %1992 = dma.done.wait [#allocation3], 49152  }
  0x2e   :  { %1993 = vsyncadd [#allocation3], 4294918144 }
  0x2f   :  { %1994 = dma.done.wait [#allocation5], 2064  }
  0x30   :  { %1995 = vsyncadd [#allocation5], 4294965232 }
  0x31   :  { %1996 = dma.done.wait [#allocation8], 16  }
  0x32   :  { %1997 = vsyncadd [#allocation8], 4294967280  ;;  %v126_v0 = vld [vmem:[#allocation2 + $0xf8] sm:$0xff]  ;;  %v125_v4 = vld [vmem:[#allocation2 + $0xf0] sm:$0xff]  ;;  %vm2005_vm0 = vmmov 0  }
  0x33   :  { %v158_v1 = vld [vmem:[#allocation2 + $0x1f8] sm:$0xff]  ;;  %1430 = vmatprep.subr.mxu0 %v126_v0  ;;  %v157_v5 = vld [vmem:[#allocation2 + $0x1f0] sm:$0xff]  ;;  %v124_v8 = vld [vmem:[#allocation2 + $0xe8] sm:$0xff] }
  0x34   :  { %v110_v2 = vld [vmem:[#allocation2 + $0x78] sm:$0xff]  ;;  %1465 = vmatprep.subr.mxu1 %v158_v1  ;;  %v109_v6 = vld [vmem:[#allocation2 + $0x70] sm:$0xff]  ;;  %v156_v9 = vld [vmem:[#allocation2 + $0x1e8] sm:$0xff] }
  0x35   :  { %v142_v3 = vld [vmem:[#allocation2 + $0x178] sm:$0xff]  ;;  %1431 = vmatpush3.msra.mxu0 %v110_v2  ;;  %v141_v7 = vld [vmem:[#allocation2 + $0x170] sm:$0xff]  ;;  %v108_v10 = vld [vmem:[#allocation2 + $0x68] sm:$0xff] }
  0x36   :  { %1466 = vmatpush3.msra.mxu1 %v142_v3  ;;  %1432 = vmatprep.subr.mxu0 %v125_v4  ;;  %v140_v11 = vld [vmem:[#allocation2 + $0x168] sm:$0xff]  ;;  %v123_v12 = vld [vmem:[#allocation2 + $0xe0] sm:$0xff]  ;;  %v122_v16 = vld [vmem:[#allocation2 + $0xd8] sm:$0xff] }
  0x37   :  { %1467 = vmatprep.subr.mxu1 %v157_v5  ;;  %1433 = vmatpush3.msra.mxu0 %v109_v6  ;;  %v155_v13 = vld [vmem:[#allocation2 + $0x1e0] sm:$0xff]  ;;  %v154_v17 = vld [vmem:[#allocation2 + $0x1d8] sm:$0xff]  ;;  %v121_v20 = vld [vmem:[#allocation2 + $0xd0] sm:$0xff] }
  0x38   :  { %1468 = vmatpush3.msra.mxu1 %v141_v7  ;;  %1434 = vmatprep.subr.mxu0 %v124_v8  ;;  %v107_v14 = vld [vmem:[#allocation2 + $0x60] sm:$0xff]  ;;  %v106_v18 = vld [vmem:[#allocation2 + $0x58] sm:$0xff]  ;;  %v153_v21 = vld [vmem:[#allocation2 + $0x1d0] sm:$0xff] }
  0x39   :  { %1469 = vmatprep.subr.mxu1 %v156_v9  ;;  %v139_v15 = vld [vmem:[#allocation2 + $0x160] sm:$0xff]  ;;  %1435 = vmatpush3.msra.mxu0 %v108_v10  ;;  %v138_v19 = vld [vmem:[#allocation2 + $0x158] sm:$0xff]  ;;  %v105_v22 = vld [vmem:[#allocation2 + $0x50] sm:$0xff] }
  0x3a   :  { %1470 = vmatpush3.msra.mxu1 %v140_v11  ;;  %1436 = vmatprep.subr.mxu0 %v123_v12  ;;  %v137_v23 = vld [vmem:[#allocation2 + $0x150] sm:$0xff]  ;;  %v120_v24 = vld [vmem:[#allocation2 + $0xc8] sm:$0xff]  ;;  %v119_v28 = vld [vmem:[#allocation2 + $0xc0] sm:$0xff] }
  0x3b   :  { %1471 = vmatprep.subr.mxu1 %v155_v13  ;;  %1437 = vmatpush3.msra.mxu0 %v107_v14  ;;  %v152_v25 = vld [vmem:[#allocation2 + $0x1c8] sm:$0xff]  ;;  %v151_v29 = vld [vmem:[#allocation2 + $0x1c0] sm:$0xff]  ;;  %v118_v32 = vld [vmem:[#allocation2 + $0xb8] sm:$0xff] }
  0x3c   :  { %1472 = vmatpush3.msra.mxu1 %v139_v15  ;;  %1438 = vmatprep.subr.mxu0 %v122_v16  ;;  %v104_v26 = vld [vmem:[#allocation2 + $0x48] sm:$0xff]  ;;  %v103_v30 = vld [vmem:[#allocation2 + $0x40] sm:$0xff]  ;;  %v150_v33 = vld [vmem:[#allocation2 + $0x1b8] sm:$0xff] }
  0x3d   :  { %1473 = vmatprep.subr.mxu1 %v154_v17  ;;  %1439 = vmatpush3.msra.mxu0 %v106_v18  ;;  %v136_v27 = vld [vmem:[#allocation2 + $0x148] sm:$0xff]  ;;  %v135_v31 = vld [vmem:[#allocation2 + $0x140] sm:$0xff]  ;;  %v102_v34 = vld [vmem:[#allocation2 + $0x38] sm:$0xff] }
  0x3e   :  { %1474 = vmatpush3.msra.mxu1 %v138_v19  ;;  %1440 = vmatprep.subr.mxu0 %v121_v20  ;;  %v134_v35 = vld [vmem:[#allocation2 + $0x138] sm:$0xff]  ;;  %v117_v36 = vld [vmem:[#allocation2 + $0xb0] sm:$0xff]  ;;  %v116_v40 = vld [vmem:[#allocation2 + $0xa8] sm:$0xff] }
  0x3f   :  { %1475 = vmatprep.subr.mxu1 %v153_v21  ;;  %1441 = vmatpush3.msra.mxu0 %v105_v22  ;;  %v149_v37 = vld [vmem:[#allocation2 + $0x1b0] sm:$0xff]  ;;  %v148_v41 = vld [vmem:[#allocation2 + $0x1a8] sm:$0xff]  ;;  %v115_v44 = vld [vmem:[#allocation2 + $0xa0] sm:$0xff] }
  0x40   :  { %1476 = vmatpush3.msra.mxu1 %v137_v23  ;;  %1442 = vmatprep.subr.mxu0 %v120_v24  ;;  %v101_v38 = vld [vmem:[#allocation2 + $0x30] sm:$0xff]  ;;  %v100_v42 = vld [vmem:[#allocation2 + $0x28] sm:$0xff]  ;;  %v147_v45 = vld [vmem:[#allocation2 + $0x1a0] sm:$0xff] }
  0x41   :  { %1477 = vmatprep.subr.mxu1 %v152_v25  ;;  %1443 = vmatpush3.msra.mxu0 %v104_v26  ;;  %v133_v39 = vld [vmem:[#allocation2 + $0x130] sm:$0xff]  ;;  %v132_v43 = vld [vmem:[#allocation2 + $0x128] sm:$0xff]  ;;  %v99_v46 = vld [vmem:[#allocation2 + $0x20] sm:$0xff] }
  0x42   :  { %1478 = vmatpush3.msra.mxu1 %v136_v27  ;;  %1444 = vmatprep.subr.mxu0 %v119_v28  ;;  %v131_v47 = vld [vmem:[#allocation2 + $0x120] sm:$0xff]  ;;  %v114_v48 = vld [vmem:[#allocation2 + $0x98] sm:$0xff]  ;;  %v113_v52 = vld [vmem:[#allocation2 + $0x90] sm:$0xff] }
  0x43   :  { %1479 = vmatprep.subr.mxu1 %v151_v29  ;;  %1445 = vmatpush3.msra.mxu0 %v103_v30  ;;  %v146_v49 = vld [vmem:[#allocation2 + $0x198] sm:$0xff]  ;;  %v145_v53 = vld [vmem:[#allocation2 + $0x190] sm:$0xff]  ;;  %v112_v56 = vld [vmem:[#allocation2 + $0x88] sm:$0xff] }
  0x44   :  { %1480 = vmatpush3.msra.mxu1 %v135_v31  ;;  %1446 = vmatprep.subr.mxu0 %v118_v32  ;;  %v98_v50 = vld [vmem:[#allocation2 + $0x18] sm:$0xff]  ;;  %v97_v54 = vld [vmem:[#allocation2 + $0x10] sm:$0xff]  ;;  %v144_v57 = vld [vmem:[#allocation2 + $0x188] sm:$0xff] }
  0x45   :  { %1481 = vmatprep.subr.mxu1 %v150_v33  ;;  %1447 = vmatpush3.msra.mxu0 %v102_v34  ;;  %v130_v51 = vld [vmem:[#allocation2 + $0x118] sm:$0xff]  ;;  %v129_v55 = vld [vmem:[#allocation2 + $0x110] sm:$0xff]  ;;  %v96_v58 = vld [vmem:[#allocation2 + $0x8] sm:$0xff] }
  0x46   :  { %1482 = vmatpush3.msra.mxu1 %v134_v35  ;;  %1448 = vmatprep.subr.mxu0 %v117_v36  ;;  %v128_v59 = vld [vmem:[#allocation2 + $0x108] sm:$0xff]  ;;  %v111_v60 = vld [vmem:[#allocation2 + $0x80] sm:$0xff]  ;;  %v74_v2 = vld [vmem:[%s2123_s0 + $0x18] sm:$0xff] }
  0x47   :  { %1483 = vmatprep.subr.mxu1 %v149_v37  ;;  %1449 = vmatpush3.msra.mxu0 %v101_v38  ;;  %v143_v61 = vld [vmem:[#allocation2 + $0x180] sm:$0xff]  ;;  %v72_v63 = vld [vmem:[%s2123_s0 + $0x8] sm:$0xff]  ;;  %v190_v3 = vld [vmem:[#allocation2 + $0x2f8] sm:$0xff] }
  0x48   :  { %1484 = vmatpush3.msra.mxu1 %v133_v39  ;;  %1450 = vmatprep.subr.mxu0 %v116_v40  ;;  %v95_v62 = vld [vmem:[#allocation2] sm:$0xff]  ;;  %v222_v4 = vld [vmem:[#allocation2 + $0x3f8] sm:$0xff]  ;;  %v73_v5 = vld [vmem:[%s2123_s0 + $0x10] sm:$0xff] }
  0x49   :  { %1485 = vmatprep.subr.mxu1 %v148_v41  ;;  %1451 = vmatpush3.msra.mxu0 %v100_v42  ;;  %v127_v0 = vld [vmem:[#allocation2 + $0x100] sm:$0xff]  ;;  %v174_v6 = vld [vmem:[#allocation2 + $0x278] sm:$0xff]  ;;  %v189_v8 = vld [vmem:[#allocation2 + $0x2f0] sm:$0xff] }
  0x4a   :  { %1486 = vmatpush3.msra.mxu1 %v132_v43  ;;  %1452 = vmatprep.subr.mxu0 %v115_v44  ;;  %v71_v1 = vld [vmem:[%s2123_s0] sm:$0xff]  ;;  %v206_v7 = vld [vmem:[#allocation2 + $0x378] sm:$0xff]  ;;  %v221_v9 = vld [vmem:[#allocation2 + $0x3f0] sm:$0xff] }
  0x4b   :  { %1487 = vmatprep.subr.mxu1 %v147_v45  ;;  %1453 = vmatpush3.msra.mxu0 %v99_v46  ;;  %v173_v10 = vld [vmem:[#allocation2 + $0x270] sm:$0xff]  ;;  %v188_v12 = vld [vmem:[#allocation2 + $0x2e8] sm:$0xff]  ;;  %v187_v16 = vld [vmem:[#allocation2 + $0x2e0] sm:$0xff] }
  0x4c   :  { %1488 = vmatpush3.msra.mxu1 %v131_v47  ;;  %1454 = vmatprep.subr.mxu0 %v114_v48  ;;  %v205_v11 = vld [vmem:[#allocation2 + $0x370] sm:$0xff]  ;;  %v220_v13 = vld [vmem:[#allocation2 + $0x3e8] sm:$0xff]  ;;  %v219_v17 = vld [vmem:[#allocation2 + $0x3e0] sm:$0xff] }
  0x4d   :  { %1489 = vmatprep.subr.mxu1 %v146_v49  ;;  %1455 = vmatpush3.msra.mxu0 %v98_v50  ;;  %v172_v14 = vld [vmem:[#allocation2 + $0x268] sm:$0xff]  ;;  %v171_v18 = vld [vmem:[#allocation2 + $0x260] sm:$0xff]  ;;  %v186_v20 = vld [vmem:[#allocation2 + $0x2d8] sm:$0xff] }
  0x4e   :  { %1490 = vmatpush3.msra.mxu1 %v130_v51  ;;  %1456 = vmatprep.subr.mxu0 %v113_v52  ;;  %v204_v15 = vld [vmem:[#allocation2 + $0x368] sm:$0xff]  ;;  %v203_v19 = vld [vmem:[#allocation2 + $0x360] sm:$0xff]  ;;  %v218_v21 = vld [vmem:[#allocation2 + $0x3d8] sm:$0xff] }
  0x4f   :  { %1491 = vmatprep.subr.mxu1 %v145_v53  ;;  %1457 = vmatpush3.msra.mxu0 %v97_v54  ;;  %v170_v22 = vld [vmem:[#allocation2 + $0x258] sm:$0xff]  ;;  %v185_v24 = vld [vmem:[#allocation2 + $0x2d0] sm:$0xff]  ;;  %v184_v28 = vld [vmem:[#allocation2 + $0x2c8] sm:$0xff] }
  0x50   :  { %1492 = vmatpush3.msra.mxu1 %v129_v55  ;;  %1458 = vmatprep.subr.mxu0 %v112_v56  ;;  %v202_v23 = vld [vmem:[#allocation2 + $0x358] sm:$0xff]  ;;  %v217_v25 = vld [vmem:[#allocation2 + $0x3d0] sm:$0xff]  ;;  %v216_v29 = vld [vmem:[#allocation2 + $0x3c8] sm:$0xff] }
  0x51   :  { %1493 = vmatprep.subr.mxu1 %v144_v57  ;;  %1459 = vmatpush3.msra.mxu0 %v96_v58  ;;  %v169_v26 = vld [vmem:[#allocation2 + $0x250] sm:$0xff]  ;;  %v168_v30 = vld [vmem:[#allocation2 + $0x248] sm:$0xff]  ;;  %v183_v32 = vld [vmem:[#allocation2 + $0x2c0] sm:$0xff] }
  0x52   :  { %1494 = vmatpush3.msra.mxu1 %v128_v59  ;;  %1460 = vmatprep.subr.mxu0 %v111_v60  ;;  %v201_v27 = vld [vmem:[#allocation2 + $0x350] sm:$0xff]  ;;  %v200_v31 = vld [vmem:[#allocation2 + $0x348] sm:$0xff]  ;;  %v215_v33 = vld [vmem:[#allocation2 + $0x3c0] sm:$0xff] }
  0x53   :  { %1495 = vmatprep.subr.mxu1 %v143_v61  ;;  %1461 = vmatpush3.msra.mxu0 %v95_v62  ;;  %v167_v34 = vld [vmem:[#allocation2 + $0x240] sm:$0xff]  ;;  %v182_v36 = vld [vmem:[#allocation2 + $0x2b8] sm:$0xff]  ;;  %v181_v40 = vld [vmem:[#allocation2 + $0x2b0] sm:$0xff] }
  0x54   :  { %550 = vmatprep.mubr.f32.mxu0 %v72_v63  ;;  %1496 = vmatpush3.msra.mxu1 %v127_v0  ;;  %v199_v35 = vld [vmem:[#allocation2 + $0x340] sm:$0xff]  ;;  %v214_v37 = vld [vmem:[#allocation2 + $0x3b8] sm:$0xff]  ;;  %v213_v41 = vld [vmem:[#allocation2 + $0x3b0] sm:$0xff] }
  0x55   :  { %551 = vmatmul.mubr.f32.vlgmr.msra.gmra.mxu0 %v71_v1  ;;  %620 = vmatprep.mubr.f32.mxu1 %v74_v2  ;;  %v166_v38 = vld [vmem:[#allocation2 + $0x238] sm:$0xff]  ;;  %v165_v42 = vld [vmem:[#allocation2 + $0x230] sm:$0xff]  ;;  %v180_v44 = vld [vmem:[#allocation2 + $0x2a8] sm:$0xff] }
  0x56   :  { %1500 = vmatprep.subr.mxu0 %v190_v3  ;;  %1535 = vmatprep.subr.mxu1 %v222_v4  ;;  %v198_v39 = vld [vmem:[#allocation2 + $0x338] sm:$0xff]  ;;  %v197_v43 = vld [vmem:[#allocation2 + $0x330] sm:$0xff]  ;;  %v212_v45 = vld [vmem:[#allocation2 + $0x3a8] sm:$0xff] }
  0x57   :  { %621 = vmatmul.mubr.f32.vlgmr.msra.gmra.mxu1 %v73_v5  ;;  %1501 = vmatpush3.msra.mxu0 %v174_v6  ;;  %v164_v46 = vld [vmem:[#allocation2 + $0x228] sm:$0xff]  ;;  %v179_v48 = vld [vmem:[#allocation2 + $0x2a0] sm:$0xff]  ;;  %v178_v52 = vld [vmem:[#allocation2 + $0x298] sm:$0xff] }
  0x58   :  { %1536 = vmatpush3.msra.mxu1 %v206_v7  ;;  %1502 = vmatprep.subr.mxu0 %v189_v8  ;;  %v196_v47 = vld [vmem:[#allocation2 + $0x328] sm:$0xff]  ;;  %v211_v49 = vld [vmem:[#allocation2 + $0x3a0] sm:$0xff]  ;;  %v210_v53 = vld [vmem:[#allocation2 + $0x398] sm:$0xff] }
  0x59   :  { %1537 = vmatprep.subr.mxu1 %v221_v9  ;;  %1503 = vmatpush3.msra.mxu0 %v173_v10  ;;  %v163_v50 = vld [vmem:[#allocation2 + $0x220] sm:$0xff]  ;;  %v162_v54 = vld [vmem:[#allocation2 + $0x218] sm:$0xff]  ;;  %v177_v56 = vld [vmem:[#allocation2 + $0x290] sm:$0xff] }
  0x5a   :  { %1538 = vmatpush3.msra.mxu1 %v205_v11  ;;  %1504 = vmatprep.subr.mxu0 %v188_v12  ;;  %v195_v51 = vld [vmem:[#allocation2 + $0x320] sm:$0xff]  ;;  %v194_v55 = vld [vmem:[#allocation2 + $0x318] sm:$0xff]  ;;  %v209_v57 = vld [vmem:[#allocation2 + $0x390] sm:$0xff] }
  0x5b   :  { %1539 = vmatprep.subr.mxu1 %v220_v13  ;;  %1505 = vmatpush3.msra.mxu0 %v172_v14  ;;  %v161_v58 = vld [vmem:[#allocation2 + $0x210] sm:$0xff]  ;;  %v176_v60 = vld [vmem:[#allocation2 + $0x288] sm:$0xff]  ;;  %v175_v0 = vld [vmem:[#allocation2 + $0x280] sm:$0xff] }
  0x5c   :  { %1540 = vmatpush3.msra.mxu1 %v204_v15  ;;  %1506 = vmatprep.subr.mxu0 %v187_v16  ;;  %v193_v59 = vld [vmem:[#allocation2 + $0x310] sm:$0xff]  ;;  %v208_v61 = vld [vmem:[#allocation2 + $0x388] sm:$0xff]  ;;  %v207_v1 = vld [vmem:[#allocation2 + $0x380] sm:$0xff] }
  0x5d   :  { %1541 = vmatprep.subr.mxu1 %v219_v17  ;;  %1507 = vmatpush3.msra.mxu0 %v171_v18  ;;  %v160_v62 = vld [vmem:[#allocation2 + $0x208] sm:$0xff]  ;;  %v159_v2 = vld [vmem:[#allocation2 + $0x200] sm:$0xff]  ;;  %v78_v6 = vld [vmem:[%s2123_s0 + $0x38] sm:$0xff] }
  0x5e   :  { %1542 = vmatpush3.msra.mxu1 %v203_v19  ;;  %1508 = vmatprep.subr.mxu0 %v186_v20  ;;  %v192_v63 = vld [vmem:[#allocation2 + $0x308] sm:$0xff]  ;;  %v191_v4 = vld [vmem:[#allocation2 + $0x300] sm:$0xff]  ;;  %v254_v7 = vld [vmem:[#allocation2 + $0x4f8] sm:$0xff] }
  0x5f   :  { %1543 = vmatprep.subr.mxu1 %v218_v21  ;;  %1509 = vmatpush3.msra.mxu0 %v170_v22  ;;  %v76_v3 = vld [vmem:[%s2123_s0 + $0x28] sm:$0xff]  ;;  %v75_v5 = vld [vmem:[%s2123_s0 + $0x20] sm:$0xff]  ;;  %v286_v8 = vld [vmem:[#allocation2 + $0x5f8] sm:$0xff] }
  0x60   :  { %1544 = vmatpush3.msra.mxu1 %v202_v23  ;;  %1510 = vmatprep.subr.mxu0 %v185_v24  ;;  %v77_v9 = vld [vmem:[%s2123_s0 + $0x30] sm:$0xff]  ;;  %v238_v10 = vld [vmem:[#allocation2 + $0x478] sm:$0xff]  ;;  %v252_v16 = vld [vmem:[#allocation2 + $0x4e8] sm:$0xff] }
  0x61   :  { %1545 = vmatprep.subr.mxu1 %v217_v25  ;;  %1511 = vmatpush3.msra.mxu0 %v169_v26  ;;  %v270_v11 = vld [vmem:[#allocation2 + $0x578] sm:$0xff]  ;;  %v253_v12 = vld [vmem:[#allocation2 + $0x4f0] sm:$0xff]  ;;  %v284_v17 = vld [vmem:[#allocation2 + $0x5e8] sm:$0xff] }
  0x62   :  { %1546 = vmatpush3.msra.mxu1 %v201_v27  ;;  %1512 = vmatprep.subr.mxu0 %v184_v28  ;;  %v285_v13 = vld [vmem:[#allocation2 + $0x5f0] sm:$0xff]  ;;  %v236_v18 = vld [vmem:[#allocation2 + $0x468] sm:$0xff]  ;;  %v251_v20 = vld [vmem:[#allocation2 + $0x4e0] sm:$0xff] }
  0x63   :  { %1547 = vmatprep.subr.mxu1 %v216_v29  ;;  %1513 = vmatpush3.msra.mxu0 %v168_v30  ;;  %v237_v14 = vld [vmem:[#allocation2 + $0x470] sm:$0xff]  ;;  %v268_v19 = vld [vmem:[#allocation2 + $0x568] sm:$0xff]  ;;  %v283_v21 = vld [vmem:[#allocation2 + $0x5e0] sm:$0xff] }
  0x64   :  { %1548 = vmatpush3.msra.mxu1 %v200_v31  ;;  %1514 = vmatprep.subr.mxu0 %v183_v32  ;;  %v269_v15 = vld [vmem:[#allocation2 + $0x570] sm:$0xff]  ;;  %v235_v22 = vld [vmem:[#allocation2 + $0x460] sm:$0xff]  ;;  %v250_v24 = vld [vmem:[#allocation2 + $0x4d8] sm:$0xff] }
  0x65   :  { %1549 = vmatprep.subr.mxu1 %v215_v33  ;;  %1515 = vmatpush3.msra.mxu0 %v167_v34  ;;  %v267_v23 = vld [vmem:[#allocation2 + $0x560] sm:$0xff]  ;;  %v282_v25 = vld [vmem:[#allocation2 + $0x5d8] sm:$0xff]  ;;  %v249_v28 = vld [vmem:[#allocation2 + $0x4d0] sm:$0xff] }
  0x66   :  { %1550 = vmatpush3.msra.mxu1 %v199_v35  ;;  %1516 = vmatprep.subr.mxu0 %v182_v36  ;;  %v234_v26 = vld [vmem:[#allocation2 + $0x458] sm:$0xff]  ;;  %v281_v29 = vld [vmem:[#allocation2 + $0x5d0] sm:$0xff]  ;;  %v248_v32 = vld [vmem:[#allocation2 + $0x4c8] sm:$0xff] }
  0x67   :  { %1551 = vmatprep.subr.mxu1 %v214_v37  ;;  %1517 = vmatpush3.msra.mxu0 %v166_v38  ;;  %v266_v27 = vld [vmem:[#allocation2 + $0x558] sm:$0xff]  ;;  %v233_v30 = vld [vmem:[#allocation2 + $0x450] sm:$0xff]  ;;  %v280_v33 = vld [vmem:[#allocation2 + $0x5c8] sm:$0xff] }
  0x68   :  { %1552 = vmatpush3.msra.mxu1 %v198_v39  ;;  %1518 = vmatprep.subr.mxu0 %v181_v40  ;;  %v265_v31 = vld [vmem:[#allocation2 + $0x550] sm:$0xff]  ;;  %v232_v34 = vld [vmem:[#allocation2 + $0x448] sm:$0xff]  ;;  %v247_v36 = vld [vmem:[#allocation2 + $0x4c0] sm:$0xff] }
  0x69   :  { %1553 = vmatprep.subr.mxu1 %v213_v41  ;;  %1519 = vmatpush3.msra.mxu0 %v165_v42  ;;  %v264_v35 = vld [vmem:[#allocation2 + $0x548] sm:$0xff]  ;;  %v279_v37 = vld [vmem:[#allocation2 + $0x5c0] sm:$0xff]  ;;  %v246_v40 = vld [vmem:[#allocation2 + $0x4b8] sm:$0xff] }
  0x6a   :  { %1554 = vmatpush3.msra.mxu1 %v197_v43  ;;  %1520 = vmatprep.subr.mxu0 %v180_v44  ;;  %v231_v38 = vld [vmem:[#allocation2 + $0x440] sm:$0xff]  ;;  %v278_v41 = vld [vmem:[#allocation2 + $0x5b8] sm:$0xff]  ;;  %v245_v44 = vld [vmem:[#allocation2 + $0x4b0] sm:$0xff] }
  0x6b   :  { %1555 = vmatprep.subr.mxu1 %v212_v45  ;;  %1521 = vmatpush3.msra.mxu0 %v164_v46  ;;  %v263_v39 = vld [vmem:[#allocation2 + $0x540] sm:$0xff]  ;;  %v230_v42 = vld [vmem:[#allocation2 + $0x438] sm:$0xff]  ;;  %v277_v45 = vld [vmem:[#allocation2 + $0x5b0] sm:$0xff] }
  0x6c   :  { %1556 = vmatpush3.msra.mxu1 %v196_v47  ;;  %1522 = vmatprep.subr.mxu0 %v179_v48  ;;  %v262_v43 = vld [vmem:[#allocation2 + $0x538] sm:$0xff]  ;;  %v229_v46 = vld [vmem:[#allocation2 + $0x430] sm:$0xff]  ;;  %v244_v48 = vld [vmem:[#allocation2 + $0x4a8] sm:$0xff] }
  0x6d   :  { %1557 = vmatprep.subr.mxu1 %v211_v49  ;;  %1523 = vmatpush3.msra.mxu0 %v163_v50  ;;  %v261_v47 = vld [vmem:[#allocation2 + $0x530] sm:$0xff]  ;;  %v276_v49 = vld [vmem:[#allocation2 + $0x5a8] sm:$0xff] }
  0x6e   :  { %1558 = vmatpush3.msra.mxu1 %v195_v51  ;;  %1524 = vmatprep.subr.mxu0 %v178_v52  ;;  %v228_v50 = vld [vmem:[#allocation2 + $0x428] sm:$0xff]  ;;  %v243_v52 = vld [vmem:[#allocation2 + $0x4a0] sm:$0xff] }
  0x6f   :  { %1559 = vmatprep.subr.mxu1 %v210_v53  ;;  %1525 = vmatpush3.msra.mxu0 %v162_v54  ;;  %v260_v51 = vld [vmem:[#allocation2 + $0x528] sm:$0xff]  ;;  %v275_v53 = vld [vmem:[#allocation2 + $0x5a0] sm:$0xff] }
  0x70   :  { %1560 = vmatpush3.msra.mxu1 %v194_v55  ;;  %1526 = vmatprep.subr.mxu0 %v177_v56  ;;  %v227_v54 = vld [vmem:[#allocation2 + $0x420] sm:$0xff]  ;;  %v242_v56 = vld [vmem:[#allocation2 + $0x498] sm:$0xff] }
  0x71   :  { %1561 = vmatprep.subr.mxu1 %v209_v57  ;;  %1527 = vmatpush3.msra.mxu0 %v161_v58  ;;  %v259_v55 = vld [vmem:[#allocation2 + $0x520] sm:$0xff]  ;;  %v274_v57 = vld [vmem:[#allocation2 + $0x598] sm:$0xff] }
  0x72   :  { %1562 = vmatpush3.msra.mxu1 %v193_v59  ;;  %1528 = vmatprep.subr.mxu0 %v176_v60  ;;  %v226_v58 = vld [vmem:[#allocation2 + $0x418] sm:$0xff]  ;;  %v241_v60 = vld [vmem:[#allocation2 + $0x490] sm:$0xff] }
  0x73   :  { %1563 = vmatprep.subr.mxu1 %v208_v61  ;;  %1529 = vmatpush3.msra.mxu0 %v160_v62  ;;  %v258_v59 = vld [vmem:[#allocation2 + $0x518] sm:$0xff]  ;;  %v273_v61 = vld [vmem:[#allocation2 + $0x590] sm:$0xff] }
  0x74   :  { %1564 = vmatpush3.msra.mxu1 %v192_v63  ;;  %1530 = vmatprep.subr.mxu0 %v175_v0  ;;  %v225_v62 = vld [vmem:[#allocation2 + $0x410] sm:$0xff]  ;;  %v240_v0 = vld [vmem:[#allocation2 + $0x488] sm:$0xff] }
  0x75   :  { %1565 = vmatprep.subr.mxu1 %v207_v1  ;;  %1531 = vmatpush3.msra.mxu0 %v159_v2  ;;  %v257_v63 = vld [vmem:[#allocation2 + $0x510] sm:$0xff]  ;;  %v272_v1 = vld [vmem:[#allocation2 + $0x588] sm:$0xff] }
  0x76   :  { %690 = vmatprep.mubr.f32.mxu0 %v76_v3  ;;  %1566 = vmatpush3.msra.mxu1 %v191_v4  ;;  %v224_v2 = vld [vmem:[#allocation2 + $0x408] sm:$0xff]  ;;  %v239_v4 = vld [vmem:[#allocation2 + $0x480] sm:$0xff] }
  0x77   :  { %691 = vmatmul.mubr.f32.vlgmr.msra.gmra.mxu0 %v75_v5  ;;  %760 = vmatprep.mubr.f32.mxu1 %v78_v6  ;;  %v256_v3 = vld [vmem:[#allocation2 + $0x508] sm:$0xff]  ;;  %v271_v5 = vld [vmem:[#allocation2 + $0x580] sm:$0xff] }
  0x78   :  { %1570 = vmatprep.subr.mxu0 %v254_v7  ;;  %1605 = vmatprep.subr.mxu1 %v286_v8  ;;  %v223_v6 = vld [vmem:[#allocation2 + $0x400] sm:$0xff]  ;;  %v80_v7 = vld [vmem:[%s2123_s0 + $0x48] sm:$0xff] }
  0x79   :  { %761 = vmatmul.mubr.f32.vlgmr.msra.gmra.mxu1 %v77_v9  ;;  %1571 = vmatpush3.msra.mxu0 %v238_v10  ;;  %v255_v8 = vld [vmem:[#allocation2 + $0x500] sm:$0xff]  ;;  %v82_v10 = vld [vmem:[%s2123_s0 + $0x58] sm:$0xff] }
  0x7a   :  { %1606 = vmatpush3.msra.mxu1 %v270_v11  ;;  %1572 = vmatprep.subr.mxu0 %v253_v12  ;;  %v79_v9 = vld [vmem:[%s2123_s0 + $0x40] sm:$0xff]  ;;  %v318_v11 = vld [vmem:[#allocation2 + $0x6f8] sm:$0xff] }
  0x7b   :  { %1607 = vmatprep.subr.mxu1 %v285_v13  ;;  %1573 = vmatpush3.msra.mxu0 %v237_v14  ;;  %v350_v12 = vld [vmem:[#allocation2 + $0x7f8] sm:$0xff]  ;;  %v81_v13 = vld [vmem:[%s2123_s0 + $0x50] sm:$0xff] }
  0x7c   :  { %1608 = vmatpush3.msra.mxu1 %v269_v15  ;;  %1574 = vmatprep.subr.mxu0 %v252_v16  ;;  %v302_v14 = vld [vmem:[#allocation2 + $0x678] sm:$0xff]  ;;  %v317_v16 = vld [vmem:[#allocation2 + $0x6f0] sm:$0xff] }
  0x7d   :  { %1609 = vmatprep.subr.mxu1 %v284_v17  ;;  %1575 = vmatpush3.msra.mxu0 %v236_v18  ;;  %v334_v15 = vld [vmem:[#allocation2 + $0x778] sm:$0xff]  ;;  %v349_v17 = vld [vmem:[#allocation2 + $0x7f0] sm:$0xff] }
  0x7e   :  { %1610 = vmatpush3.msra.mxu1 %v268_v19  ;;  %1576 = vmatprep.subr.mxu0 %v251_v20  ;;  %v301_v18 = vld [vmem:[#allocation2 + $0x670] sm:$0xff]  ;;  %v316_v20 = vld [vmem:[#allocation2 + $0x6e8] sm:$0xff] }
  0x7f   :  { %1611 = vmatprep.subr.mxu1 %v283_v21  ;;  %1577 = vmatpush3.msra.mxu0 %v235_v22  ;;  %v333_v19 = vld [vmem:[#allocation2 + $0x770] sm:$0xff]  ;;  %v348_v21 = vld [vmem:[#allocation2 + $0x7e8] sm:$0xff] }
  0x80   :  { %1612 = vmatpush3.msra.mxu1 %v267_v23  ;;  %1578 = vmatprep.subr.mxu0 %v250_v24  ;;  %v300_v22 = vld [vmem:[#allocation2 + $0x668] sm:$0xff]  ;;  %v315_v24 = vld [vmem:[#allocation2 + $0x6e0] sm:$0xff] }
  0x81   :  { %1613 = vmatprep.subr.mxu1 %v282_v25  ;;  %1579 = vmatpush3.msra.mxu0 %v234_v26  ;;  %v332_v23 = vld [vmem:[#allocation2 + $0x768] sm:$0xff]  ;;  %v347_v25 = vld [vmem:[#allocation2 + $0x7e0] sm:$0xff] }
  0x82   :  { %1614 = vmatpush3.msra.mxu1 %v266_v27  ;;  %1580 = vmatprep.subr.mxu0 %v249_v28  ;;  %v299_v26 = vld [vmem:[#allocation2 + $0x660] sm:$0xff]  ;;  %v314_v28 = vld [vmem:[#allocation2 + $0x6d8] sm:$0xff] }
  0x83   :  { %1615 = vmatprep.subr.mxu1 %v281_v29  ;;  %1581 = vmatpush3.msra.mxu0 %v233_v30  ;;  %v331_v27 = vld [vmem:[#allocation2 + $0x760] sm:$0xff]  ;;  %v346_v29 = vld [vmem:[#allocation2 + $0x7d8] sm:$0xff] }
  0x84   :  { %1616 = vmatpush3.msra.mxu1 %v265_v31  ;;  %1582 = vmatprep.subr.mxu0 %v248_v32  ;;  %v298_v30 = vld [vmem:[#allocation2 + $0x658] sm:$0xff]  ;;  %v313_v32 = vld [vmem:[#allocation2 + $0x6d0] sm:$0xff] }
  0x85   :  { %1617 = vmatprep.subr.mxu1 %v280_v33  ;;  %1583 = vmatpush3.msra.mxu0 %v232_v34  ;;  %v330_v31 = vld [vmem:[#allocation2 + $0x758] sm:$0xff]  ;;  %v345_v33 = vld [vmem:[#allocation2 + $0x7d0] sm:$0xff] }
  0x86   :  { %1618 = vmatpush3.msra.mxu1 %v264_v35  ;;  %1584 = vmatprep.subr.mxu0 %v247_v36  ;;  %v297_v34 = vld [vmem:[#allocation2 + $0x650] sm:$0xff]  ;;  %v312_v36 = vld [vmem:[#allocation2 + $0x6c8] sm:$0xff] }
  0x87   :  { %1619 = vmatprep.subr.mxu1 %v279_v37  ;;  %1585 = vmatpush3.msra.mxu0 %v231_v38  ;;  %v329_v35 = vld [vmem:[#allocation2 + $0x750] sm:$0xff]  ;;  %v344_v37 = vld [vmem:[#allocation2 + $0x7c8] sm:$0xff] }
  0x88   :  { %1620 = vmatpush3.msra.mxu1 %v263_v39  ;;  %1586 = vmatprep.subr.mxu0 %v246_v40  ;;  %v296_v38 = vld [vmem:[#allocation2 + $0x648] sm:$0xff]  ;;  %v311_v40 = vld [vmem:[#allocation2 + $0x6c0] sm:$0xff] }
  0x89   :  { %1621 = vmatprep.subr.mxu1 %v278_v41  ;;  %1587 = vmatpush3.msra.mxu0 %v230_v42  ;;  %v328_v39 = vld [vmem:[#allocation2 + $0x748] sm:$0xff]  ;;  %v343_v41 = vld [vmem:[#allocation2 + $0x7c0] sm:$0xff] }
  0x8a   :  { %1622 = vmatpush3.msra.mxu1 %v262_v43  ;;  %1588 = vmatprep.subr.mxu0 %v245_v44  ;;  %v295_v42 = vld [vmem:[#allocation2 + $0x640] sm:$0xff]  ;;  %v310_v44 = vld [vmem:[#allocation2 + $0x6b8] sm:$0xff] }
  0x8b   :  { %1623 = vmatprep.subr.mxu1 %v277_v45  ;;  %1589 = vmatpush3.msra.mxu0 %v229_v46  ;;  %v327_v43 = vld [vmem:[#allocation2 + $0x740] sm:$0xff]  ;;  %v342_v45 = vld [vmem:[#allocation2 + $0x7b8] sm:$0xff] }
  0x8c   :  { %1624 = vmatpush3.msra.mxu1 %v261_v47  ;;  %1590 = vmatprep.subr.mxu0 %v244_v48  ;;  %v294_v46 = vld [vmem:[#allocation2 + $0x638] sm:$0xff]  ;;  %v309_v48 = vld [vmem:[#allocation2 + $0x6b0] sm:$0xff] }
  0x8d   :  { %1625 = vmatprep.subr.mxu1 %v276_v49  ;;  %1591 = vmatpush3.msra.mxu0 %v228_v50  ;;  %v326_v47 = vld [vmem:[#allocation2 + $0x738] sm:$0xff]  ;;  %v341_v49 = vld [vmem:[#allocation2 + $0x7b0] sm:$0xff] }
  0x8e   :  { %1626 = vmatpush3.msra.mxu1 %v260_v51  ;;  %1592 = vmatprep.subr.mxu0 %v243_v52  ;;  %v293_v50 = vld [vmem:[#allocation2 + $0x630] sm:$0xff]  ;;  %v308_v52 = vld [vmem:[#allocation2 + $0x6a8] sm:$0xff] }
  0x8f   :  { %1627 = vmatprep.subr.mxu1 %v275_v53  ;;  %1593 = vmatpush3.msra.mxu0 %v227_v54  ;;  %v325_v51 = vld [vmem:[#allocation2 + $0x730] sm:$0xff]  ;;  %v340_v53 = vld [vmem:[#allocation2 + $0x7a8] sm:$0xff] }
  0x90   :  { %1628 = vmatpush3.msra.mxu1 %v259_v55  ;;  %1594 = vmatprep.subr.mxu0 %v242_v56  ;;  %v292_v54 = vld [vmem:[#allocation2 + $0x628] sm:$0xff]  ;;  %v307_v56 = vld [vmem:[#allocation2 + $0x6a0] sm:$0xff] }
  0x91   :  { %1629 = vmatprep.subr.mxu1 %v274_v57  ;;  %1595 = vmatpush3.msra.mxu0 %v226_v58  ;;  %v324_v55 = vld [vmem:[#allocation2 + $0x728] sm:$0xff]  ;;  %v339_v57 = vld [vmem:[#allocation2 + $0x7a0] sm:$0xff] }
  0x92   :  { %1630 = vmatpush3.msra.mxu1 %v258_v59  ;;  %1596 = vmatprep.subr.mxu0 %v241_v60  ;;  %v291_v58 = vld [vmem:[#allocation2 + $0x620] sm:$0xff]  ;;  %v306_v60 = vld [vmem:[#allocation2 + $0x698] sm:$0xff] }
  0x93   :  { %1631 = vmatprep.subr.mxu1 %v273_v61  ;;  %1597 = vmatpush3.msra.mxu0 %v225_v62  ;;  %v323_v59 = vld [vmem:[#allocation2 + $0x720] sm:$0xff]  ;;  %v338_v61 = vld [vmem:[#allocation2 + $0x798] sm:$0xff] }
  0x94   :  { %1632 = vmatpush3.msra.mxu1 %v257_v63  ;;  %1598 = vmatprep.subr.mxu0 %v240_v0  ;;  %v290_v62 = vld [vmem:[#allocation2 + $0x618] sm:$0xff]  ;;  %v305_v0 = vld [vmem:[#allocation2 + $0x690] sm:$0xff] }
  0x95   :  { %1633 = vmatprep.subr.mxu1 %v272_v1  ;;  %1599 = vmatpush3.msra.mxu0 %v224_v2  ;;  %v322_v63 = vld [vmem:[#allocation2 + $0x718] sm:$0xff]  ;;  %v337_v1 = vld [vmem:[#allocation2 + $0x790] sm:$0xff] }
  0x96   :  { %1634 = vmatpush3.msra.mxu1 %v256_v3  ;;  %1600 = vmatprep.subr.mxu0 %v239_v4  ;;  %v289_v2 = vld [vmem:[#allocation2 + $0x610] sm:$0xff]  ;;  %v304_v4 = vld [vmem:[#allocation2 + $0x688] sm:$0xff] }
  0x97   :  { %1635 = vmatprep.subr.mxu1 %v271_v5  ;;  %1601 = vmatpush3.msra.mxu0 %v223_v6  ;;  %v321_v3 = vld [vmem:[#allocation2 + $0x710] sm:$0xff]  ;;  %v336_v5 = vld [vmem:[#allocation2 + $0x788] sm:$0xff] }
  0x98   :  { %830 = vmatprep.mubr.f32.mxu0 %v80_v7  ;;  %1636 = vmatpush3.msra.mxu1 %v255_v8  ;;  %v288_v6 = vld [vmem:[#allocation2 + $0x608] sm:$0xff]  ;;  %v303_v8 = vld [vmem:[#allocation2 + $0x680] sm:$0xff] }
  0x99   :  { %831 = vmatmul.mubr.f32.vlgmr.msra.gmra.mxu0 %v79_v9  ;;  %900 = vmatprep.mubr.f32.mxu1 %v82_v10  ;;  %v320_v7 = vld [vmem:[#allocation2 + $0x708] sm:$0xff]  ;;  %v335_v9 = vld [vmem:[#allocation2 + $0x780] sm:$0xff] }
  0x9a   :  { %1640 = vmatprep.subr.mxu0 %v318_v11  ;;  %1675 = vmatprep.subr.mxu1 %v350_v12  ;;  %v287_v10 = vld [vmem:[#allocation2 + $0x600] sm:$0xff]  ;;  %v84_v11 = vld [vmem:[%s2123_s0 + $0x68] sm:$0xff] }
  0x9b   :  { %901 = vmatmul.mubr.f32.vlgmr.msra.gmra.mxu1 %v81_v13  ;;  %1641 = vmatpush3.msra.mxu0 %v302_v14  ;;  %v319_v12 = vld [vmem:[#allocation2 + $0x700] sm:$0xff]  ;;  %v86_v14 = vld [vmem:[%s2123_s0 + $0x78] sm:$0xff] }
  0x9c   :  { %1676 = vmatpush3.msra.mxu1 %v334_v15  ;;  %1642 = vmatprep.subr.mxu0 %v317_v16  ;;  %v83_v13 = vld [vmem:[%s2123_s0 + $0x60] sm:$0xff]  ;;  %v382_v15 = vld [vmem:[#allocation2 + $0x8f8] sm:$0xff] }
  0x9d   :  { %1677 = vmatprep.subr.mxu1 %v349_v17  ;;  %1643 = vmatpush3.msra.mxu0 %v301_v18  ;;  %v414_v16 = vld [vmem:[#allocation2 + $0x9f8] sm:$0xff]  ;;  %v85_v17 = vld [vmem:[%s2123_s0 + $0x70] sm:$0xff] }
  0x9e   :  { %1678 = vmatpush3.msra.mxu1 %v333_v19  ;;  %1644 = vmatprep.subr.mxu0 %v316_v20  ;;  %v366_v18 = vld [vmem:[#allocation2 + $0x878] sm:$0xff]  ;;  %v381_v20 = vld [vmem:[#allocation2 + $0x8f0] sm:$0xff] }
  0x9f   :  { %1679 = vmatprep.subr.mxu1 %v348_v21  ;;  %1645 = vmatpush3.msra.mxu0 %v300_v22  ;;  %v398_v19 = vld [vmem:[#allocation2 + $0x978] sm:$0xff]  ;;  %v413_v21 = vld [vmem:[#allocation2 + $0x9f0] sm:$0xff] }
  0xa0   :  { %1680 = vmatpush3.msra.mxu1 %v332_v23  ;;  %1646 = vmatprep.subr.mxu0 %v315_v24  ;;  %v365_v22 = vld [vmem:[#allocation2 + $0x870] sm:$0xff]  ;;  %v380_v24 = vld [vmem:[#allocation2 + $0x8e8] sm:$0xff] }
  0xa1   :  { %1681 = vmatprep.subr.mxu1 %v347_v25  ;;  %1647 = vmatpush3.msra.mxu0 %v299_v26  ;;  %v397_v23 = vld [vmem:[#allocation2 + $0x970] sm:$0xff]  ;;  %v412_v25 = vld [vmem:[#allocation2 + $0x9e8] sm:$0xff] }
  0xa2   :  { %1682 = vmatpush3.msra.mxu1 %v331_v27  ;;  %1648 = vmatprep.subr.mxu0 %v314_v28  ;;  %v364_v26 = vld [vmem:[#allocation2 + $0x868] sm:$0xff]  ;;  %v379_v28 = vld [vmem:[#allocation2 + $0x8e0] sm:$0xff] }
  0xa3   :  { %1683 = vmatprep.subr.mxu1 %v346_v29  ;;  %1649 = vmatpush3.msra.mxu0 %v298_v30  ;;  %v396_v27 = vld [vmem:[#allocation2 + $0x968] sm:$0xff]  ;;  %v411_v29 = vld [vmem:[#allocation2 + $0x9e0] sm:$0xff] }
  0xa4   :  { %1684 = vmatpush3.msra.mxu1 %v330_v31  ;;  %1650 = vmatprep.subr.mxu0 %v313_v32  ;;  %v363_v30 = vld [vmem:[#allocation2 + $0x860] sm:$0xff]  ;;  %v378_v32 = vld [vmem:[#allocation2 + $0x8d8] sm:$0xff] }
  0xa5   :  { %1685 = vmatprep.subr.mxu1 %v345_v33  ;;  %1651 = vmatpush3.msra.mxu0 %v297_v34  ;;  %v395_v31 = vld [vmem:[#allocation2 + $0x960] sm:$0xff]  ;;  %v410_v33 = vld [vmem:[#allocation2 + $0x9d8] sm:$0xff] }
  0xa6   :  { %1686 = vmatpush3.msra.mxu1 %v329_v35  ;;  %1652 = vmatprep.subr.mxu0 %v312_v36  ;;  %v362_v34 = vld [vmem:[#allocation2 + $0x858] sm:$0xff]  ;;  %v377_v36 = vld [vmem:[#allocation2 + $0x8d0] sm:$0xff] }
  0xa7   :  { %1687 = vmatprep.subr.mxu1 %v344_v37  ;;  %1653 = vmatpush3.msra.mxu0 %v296_v38  ;;  %v394_v35 = vld [vmem:[#allocation2 + $0x958] sm:$0xff]  ;;  %v409_v37 = vld [vmem:[#allocation2 + $0x9d0] sm:$0xff] }
  0xa8   :  { %1688 = vmatpush3.msra.mxu1 %v328_v39  ;;  %1654 = vmatprep.subr.mxu0 %v311_v40  ;;  %v361_v38 = vld [vmem:[#allocation2 + $0x850] sm:$0xff]  ;;  %v376_v40 = vld [vmem:[#allocation2 + $0x8c8] sm:$0xff] }
  0xa9   :  { %1689 = vmatprep.subr.mxu1 %v343_v41  ;;  %1655 = vmatpush3.msra.mxu0 %v295_v42  ;;  %v393_v39 = vld [vmem:[#allocation2 + $0x950] sm:$0xff]  ;;  %v408_v41 = vld [vmem:[#allocation2 + $0x9c8] sm:$0xff] }
  0xaa   :  { %1690 = vmatpush3.msra.mxu1 %v327_v43  ;;  %1656 = vmatprep.subr.mxu0 %v310_v44  ;;  %v360_v42 = vld [vmem:[#allocation2 + $0x848] sm:$0xff]  ;;  %v375_v44 = vld [vmem:[#allocation2 + $0x8c0] sm:$0xff] }
  0xab   :  { %1691 = vmatprep.subr.mxu1 %v342_v45  ;;  %1657 = vmatpush3.msra.mxu0 %v294_v46  ;;  %v392_v43 = vld [vmem:[#allocation2 + $0x948] sm:$0xff]  ;;  %v407_v45 = vld [vmem:[#allocation2 + $0x9c0] sm:$0xff] }
  0xac   :  { %1692 = vmatpush3.msra.mxu1 %v326_v47  ;;  %1658 = vmatprep.subr.mxu0 %v309_v48  ;;  %v359_v46 = vld [vmem:[#allocation2 + $0x840] sm:$0xff]  ;;  %v374_v48 = vld [vmem:[#allocation2 + $0x8b8] sm:$0xff] }
  0xad   :  { %1693 = vmatprep.subr.mxu1 %v341_v49  ;;  %1659 = vmatpush3.msra.mxu0 %v293_v50  ;;  %v391_v47 = vld [vmem:[#allocation2 + $0x940] sm:$0xff]  ;;  %v406_v49 = vld [vmem:[#allocation2 + $0x9b8] sm:$0xff] }
  0xae   :  { %1694 = vmatpush3.msra.mxu1 %v325_v51  ;;  %1660 = vmatprep.subr.mxu0 %v308_v52  ;;  %v358_v50 = vld [vmem:[#allocation2 + $0x838] sm:$0xff]  ;;  %v373_v52 = vld [vmem:[#allocation2 + $0x8b0] sm:$0xff] }
  0xaf   :  { %1695 = vmatprep.subr.mxu1 %v340_v53  ;;  %1661 = vmatpush3.msra.mxu0 %v292_v54  ;;  %v390_v51 = vld [vmem:[#allocation2 + $0x938] sm:$0xff]  ;;  %v405_v53 = vld [vmem:[#allocation2 + $0x9b0] sm:$0xff] }
  0xb0   :  { %1696 = vmatpush3.msra.mxu1 %v324_v55  ;;  %1662 = vmatprep.subr.mxu0 %v307_v56  ;;  %v357_v54 = vld [vmem:[#allocation2 + $0x830] sm:$0xff]  ;;  %v372_v56 = vld [vmem:[#allocation2 + $0x8a8] sm:$0xff] }
  0xb1   :  { %1697 = vmatprep.subr.mxu1 %v339_v57  ;;  %1663 = vmatpush3.msra.mxu0 %v291_v58  ;;  %v389_v55 = vld [vmem:[#allocation2 + $0x930] sm:$0xff]  ;;  %v404_v57 = vld [vmem:[#allocation2 + $0x9a8] sm:$0xff] }
  0xb2   :  { %1698 = vmatpush3.msra.mxu1 %v323_v59  ;;  %1664 = vmatprep.subr.mxu0 %v306_v60  ;;  %v356_v58 = vld [vmem:[#allocation2 + $0x828] sm:$0xff]  ;;  %v371_v60 = vld [vmem:[#allocation2 + $0x8a0] sm:$0xff] }
  0xb3   :  { %1699 = vmatprep.subr.mxu1 %v338_v61  ;;  %1665 = vmatpush3.msra.mxu0 %v290_v62  ;;  %v388_v59 = vld [vmem:[#allocation2 + $0x928] sm:$0xff]  ;;  %v403_v61 = vld [vmem:[#allocation2 + $0x9a0] sm:$0xff] }
  0xb4   :  { %1700 = vmatpush3.msra.mxu1 %v322_v63  ;;  %1666 = vmatprep.subr.mxu0 %v305_v0  ;;  %v355_v62 = vld [vmem:[#allocation2 + $0x820] sm:$0xff]  ;;  %v370_v0 = vld [vmem:[#allocation2 + $0x898] sm:$0xff] }
  0xb5   :  { %1701 = vmatprep.subr.mxu1 %v337_v1  ;;  %1667 = vmatpush3.msra.mxu0 %v289_v2  ;;  %v387_v63 = vld [vmem:[#allocation2 + $0x920] sm:$0xff]  ;;  %v402_v1 = vld [vmem:[#allocation2 + $0x998] sm:$0xff] }
  0xb6   :  { %1702 = vmatpush3.msra.mxu1 %v321_v3  ;;  %1668 = vmatprep.subr.mxu0 %v304_v4  ;;  %v354_v2 = vld [vmem:[#allocation2 + $0x818] sm:$0xff]  ;;  %v369_v4 = vld [vmem:[#allocation2 + $0x890] sm:$0xff] }
  0xb7   :  { %1703 = vmatprep.subr.mxu1 %v336_v5  ;;  %1669 = vmatpush3.msra.mxu0 %v288_v6  ;;  %v386_v3 = vld [vmem:[#allocation2 + $0x918] sm:$0xff]  ;;  %v401_v5 = vld [vmem:[#allocation2 + $0x990] sm:$0xff] }
  0xb8   :  { %1704 = vmatpush3.msra.mxu1 %v320_v7  ;;  %1670 = vmatprep.subr.mxu0 %v303_v8  ;;  %v353_v6 = vld [vmem:[#allocation2 + $0x810] sm:$0xff]  ;;  %v368_v8 = vld [vmem:[#allocation2 + $0x888] sm:$0xff] }
  0xb9   :  { %1705 = vmatprep.subr.mxu1 %v335_v9  ;;  %1671 = vmatpush3.msra.mxu0 %v287_v10  ;;  %v385_v7 = vld [vmem:[#allocation2 + $0x910] sm:$0xff]  ;;  %v400_v9 = vld [vmem:[#allocation2 + $0x988] sm:$0xff] }
  0xba   :  { %970 = vmatprep.mubr.f32.mxu0 %v84_v11  ;;  %1706 = vmatpush3.msra.mxu1 %v319_v12  ;;  %v352_v10 = vld [vmem:[#allocation2 + $0x808] sm:$0xff]  ;;  %v367_v12 = vld [vmem:[#allocation2 + $0x880] sm:$0xff] }
  0xbb   :  { %971 = vmatmul.mubr.f32.vlgmr.msra.gmra.mxu0 %v83_v13  ;;  %1040 = vmatprep.mubr.f32.mxu1 %v86_v14  ;;  %v384_v11 = vld [vmem:[#allocation2 + $0x908] sm:$0xff]  ;;  %v399_v13 = vld [vmem:[#allocation2 + $0x980] sm:$0xff] }
  0xbc   :  { %1710 = vmatprep.subr.mxu0 %v382_v15  ;;  %1745 = vmatprep.subr.mxu1 %v414_v16  ;;  %v351_v14 = vld [vmem:[#allocation2 + $0x800] sm:$0xff]  ;;  %v88_v15 = vld [vmem:[%s2123_s0 + $0x88] sm:$0xff] }
  0xbd   :  { %1041 = vmatmul.mubr.f32.vlgmr.msra.gmra.mxu1 %v85_v17  ;;  %1711 = vmatpush3.msra.mxu0 %v366_v18  ;;  %v383_v16 = vld [vmem:[#allocation2 + $0x900] sm:$0xff]  ;;  %v90_v18 = vld [vmem:[%s2123_s0 + $0x98] sm:$0xff] }
  0xbe   :  { %1746 = vmatpush3.msra.mxu1 %v398_v19  ;;  %1712 = vmatprep.subr.mxu0 %v381_v20  ;;  %v87_v17 = vld [vmem:[%s2123_s0 + $0x80] sm:$0xff]  ;;  %v446_v19 = vld [vmem:[#allocation2 + $0xaf8] sm:$0xff] }
  0xbf   :  { %1747 = vmatprep.subr.mxu1 %v413_v21  ;;  %1713 = vmatpush3.msra.mxu0 %v365_v22  ;;  %v478_v20 = vld [vmem:[#allocation2 + $0xbf8] sm:$0xff]  ;;  %v89_v21 = vld [vmem:[%s2123_s0 + $0x90] sm:$0xff] }
  0xc0   :  { %1748 = vmatpush3.msra.mxu1 %v397_v23  ;;  %1714 = vmatprep.subr.mxu0 %v380_v24  ;;  %v430_v22 = vld [vmem:[#allocation2 + $0xa78] sm:$0xff]  ;;  %v445_v24 = vld [vmem:[#allocation2 + $0xaf0] sm:$0xff] }
  0xc1   :  { %1749 = vmatprep.subr.mxu1 %v412_v25  ;;  %1715 = vmatpush3.msra.mxu0 %v364_v26  ;;  %v462_v23 = vld [vmem:[#allocation2 + $0xb78] sm:$0xff]  ;;  %v477_v25 = vld [vmem:[#allocation2 + $0xbf0] sm:$0xff] }
  0xc2   :  { %1750 = vmatpush3.msra.mxu1 %v396_v27  ;;  %1716 = vmatprep.subr.mxu0 %v379_v28  ;;  %v429_v26 = vld [vmem:[#allocation2 + $0xa70] sm:$0xff]  ;;  %v444_v28 = vld [vmem:[#allocation2 + $0xae8] sm:$0xff] }
  0xc3   :  { %1751 = vmatprep.subr.mxu1 %v411_v29  ;;  %1717 = vmatpush3.msra.mxu0 %v363_v30  ;;  %v461_v27 = vld [vmem:[#allocation2 + $0xb70] sm:$0xff]  ;;  %v476_v29 = vld [vmem:[#allocation2 + $0xbe8] sm:$0xff] }
  0xc4   :  { %1752 = vmatpush3.msra.mxu1 %v395_v31  ;;  %1718 = vmatprep.subr.mxu0 %v378_v32  ;;  %v428_v30 = vld [vmem:[#allocation2 + $0xa68] sm:$0xff]  ;;  %v443_v32 = vld [vmem:[#allocation2 + $0xae0] sm:$0xff] }
  0xc5   :  { %1753 = vmatprep.subr.mxu1 %v410_v33  ;;  %1719 = vmatpush3.msra.mxu0 %v362_v34  ;;  %v460_v31 = vld [vmem:[#allocation2 + $0xb68] sm:$0xff]  ;;  %v475_v33 = vld [vmem:[#allocation2 + $0xbe0] sm:$0xff] }
  0xc6   :  { %1754 = vmatpush3.msra.mxu1 %v394_v35  ;;  %1720 = vmatprep.subr.mxu0 %v377_v36  ;;  %v427_v34 = vld [vmem:[#allocation2 + $0xa60] sm:$0xff]  ;;  %v442_v36 = vld [vmem:[#allocation2 + $0xad8] sm:$0xff] }
  0xc7   :  { %1755 = vmatprep.subr.mxu1 %v409_v37  ;;  %1721 = vmatpush3.msra.mxu0 %v361_v38  ;;  %v459_v35 = vld [vmem:[#allocation2 + $0xb60] sm:$0xff]  ;;  %v474_v37 = vld [vmem:[#allocation2 + $0xbd8] sm:$0xff] }
  0xc8   :  { %1756 = vmatpush3.msra.mxu1 %v393_v39  ;;  %1722 = vmatprep.subr.mxu0 %v376_v40  ;;  %v426_v38 = vld [vmem:[#allocation2 + $0xa58] sm:$0xff]  ;;  %v441_v40 = vld [vmem:[#allocation2 + $0xad0] sm:$0xff] }
  0xc9   :  { %1757 = vmatprep.subr.mxu1 %v408_v41  ;;  %1723 = vmatpush3.msra.mxu0 %v360_v42  ;;  %v458_v39 = vld [vmem:[#allocation2 + $0xb58] sm:$0xff]  ;;  %v473_v41 = vld [vmem:[#allocation2 + $0xbd0] sm:$0xff] }
  0xca   :  { %1758 = vmatpush3.msra.mxu1 %v392_v43  ;;  %1724 = vmatprep.subr.mxu0 %v375_v44  ;;  %v425_v42 = vld [vmem:[#allocation2 + $0xa50] sm:$0xff]  ;;  %v440_v44 = vld [vmem:[#allocation2 + $0xac8] sm:$0xff] }
  0xcb   :  { %1759 = vmatprep.subr.mxu1 %v407_v45  ;;  %1725 = vmatpush3.msra.mxu0 %v359_v46  ;;  %v457_v43 = vld [vmem:[#allocation2 + $0xb50] sm:$0xff]  ;;  %v472_v45 = vld [vmem:[#allocation2 + $0xbc8] sm:$0xff] }
  0xcc   :  { %1760 = vmatpush3.msra.mxu1 %v391_v47  ;;  %1726 = vmatprep.subr.mxu0 %v374_v48  ;;  %v424_v46 = vld [vmem:[#allocation2 + $0xa48] sm:$0xff]  ;;  %v439_v48 = vld [vmem:[#allocation2 + $0xac0] sm:$0xff] }
  0xcd   :  { %1761 = vmatprep.subr.mxu1 %v406_v49  ;;  %1727 = vmatpush3.msra.mxu0 %v358_v50  ;;  %v456_v47 = vld [vmem:[#allocation2 + $0xb48] sm:$0xff]  ;;  %v471_v49 = vld [vmem:[#allocation2 + $0xbc0] sm:$0xff] }
  0xce   :  { %1762 = vmatpush3.msra.mxu1 %v390_v51  ;;  %1728 = vmatprep.subr.mxu0 %v373_v52  ;;  %v423_v50 = vld [vmem:[#allocation2 + $0xa40] sm:$0xff]  ;;  %v438_v52 = vld [vmem:[#allocation2 + $0xab8] sm:$0xff] }
  0xcf   :  { %1763 = vmatprep.subr.mxu1 %v405_v53  ;;  %1729 = vmatpush3.msra.mxu0 %v357_v54  ;;  %v455_v51 = vld [vmem:[#allocation2 + $0xb40] sm:$0xff]  ;;  %v470_v53 = vld [vmem:[#allocation2 + $0xbb8] sm:$0xff] }
  0xd0   :  { %1764 = vmatpush3.msra.mxu1 %v389_v55  ;;  %1730 = vmatprep.subr.mxu0 %v372_v56  ;;  %v422_v54 = vld [vmem:[#allocation2 + $0xa38] sm:$0xff]  ;;  %v437_v56 = vld [vmem:[#allocation2 + $0xab0] sm:$0xff] }
  0xd1   :  { %1765 = vmatprep.subr.mxu1 %v404_v57  ;;  %1731 = vmatpush3.msra.mxu0 %v356_v58  ;;  %v454_v55 = vld [vmem:[#allocation2 + $0xb38] sm:$0xff]  ;;  %v469_v57 = vld [vmem:[#allocation2 + $0xbb0] sm:$0xff] }
  0xd2   :  { %1766 = vmatpush3.msra.mxu1 %v388_v59  ;;  %1732 = vmatprep.subr.mxu0 %v371_v60  ;;  %v421_v58 = vld [vmem:[#allocation2 + $0xa30] sm:$0xff]  ;;  %v436_v60 = vld [vmem:[#allocation2 + $0xaa8] sm:$0xff] }
  0xd3   :  { %1767 = vmatprep.subr.mxu1 %v403_v61  ;;  %1733 = vmatpush3.msra.mxu0 %v355_v62  ;;  %v453_v59 = vld [vmem:[#allocation2 + $0xb30] sm:$0xff]  ;;  %v468_v61 = vld [vmem:[#allocation2 + $0xba8] sm:$0xff] }
  0xd4   :  { %1768 = vmatpush3.msra.mxu1 %v387_v63  ;;  %1734 = vmatprep.subr.mxu0 %v370_v0  ;;  %v420_v62 = vld [vmem:[#allocation2 + $0xa28] sm:$0xff]  ;;  %v435_v0 = vld [vmem:[#allocation2 + $0xaa0] sm:$0xff] }
  0xd5   :  { %1769 = vmatprep.subr.mxu1 %v402_v1  ;;  %1735 = vmatpush3.msra.mxu0 %v354_v2  ;;  %v452_v63 = vld [vmem:[#allocation2 + $0xb28] sm:$0xff]  ;;  %v467_v1 = vld [vmem:[#allocation2 + $0xba0] sm:$0xff] }
  0xd6   :  { %1770 = vmatpush3.msra.mxu1 %v386_v3  ;;  %1736 = vmatprep.subr.mxu0 %v369_v4  ;;  %v419_v2 = vld [vmem:[#allocation2 + $0xa20] sm:$0xff]  ;;  %v434_v4 = vld [vmem:[#allocation2 + $0xa98] sm:$0xff] }
  0xd7   :  { %1771 = vmatprep.subr.mxu1 %v401_v5  ;;  %1737 = vmatpush3.msra.mxu0 %v353_v6  ;;  %v451_v3 = vld [vmem:[#allocation2 + $0xb20] sm:$0xff]  ;;  %v466_v5 = vld [vmem:[#allocation2 + $0xb98] sm:$0xff] }
  0xd8   :  { %1772 = vmatpush3.msra.mxu1 %v385_v7  ;;  %1738 = vmatprep.subr.mxu0 %v368_v8  ;;  %v418_v6 = vld [vmem:[#allocation2 + $0xa18] sm:$0xff]  ;;  %v433_v8 = vld [vmem:[#allocation2 + $0xa90] sm:$0xff] }
  0xd9   :  { %1773 = vmatprep.subr.mxu1 %v400_v9  ;;  %1739 = vmatpush3.msra.mxu0 %v352_v10  ;;  %v450_v7 = vld [vmem:[#allocation2 + $0xb18] sm:$0xff]  ;;  %v465_v9 = vld [vmem:[#allocation2 + $0xb90] sm:$0xff] }
  0xda   :  { %1774 = vmatpush3.msra.mxu1 %v384_v11  ;;  %1740 = vmatprep.subr.mxu0 %v367_v12  ;;  %v417_v10 = vld [vmem:[#allocation2 + $0xa10] sm:$0xff]  ;;  %v432_v12 = vld [vmem:[#allocation2 + $0xa88] sm:$0xff] }
  0xdb   :  { %1775 = vmatprep.subr.mxu1 %v399_v13  ;;  %1741 = vmatpush3.msra.mxu0 %v351_v14  ;;  %v449_v11 = vld [vmem:[#allocation2 + $0xb10] sm:$0xff]  ;;  %v464_v13 = vld [vmem:[#allocation2 + $0xb88] sm:$0xff] }
  0xdc   :  { %1110 = vmatprep.mubr.f32.mxu0 %v88_v15  ;;  %1776 = vmatpush3.msra.mxu1 %v383_v16  ;;  %v416_v14 = vld [vmem:[#allocation2 + $0xa08] sm:$0xff]  ;;  %v431_v16 = vld [vmem:[#allocation2 + $0xa80] sm:$0xff] }
  0xdd   :  { %1111 = vmatmul.mubr.f32.vlgmr.msra.gmra.mxu0 %v87_v17  ;;  %1180 = vmatprep.mubr.f32.mxu1 %v90_v18  ;;  %v448_v15 = vld [vmem:[#allocation2 + $0xb08] sm:$0xff]  ;;  %v463_v17 = vld [vmem:[#allocation2 + $0xb80] sm:$0xff] }
  0xde   :  { %1780 = vmatprep.subr.mxu0 %v446_v19  ;;  %1815 = vmatprep.subr.mxu1 %v478_v20  ;;  %v415_v18 = vld [vmem:[#allocation2 + $0xa00] sm:$0xff]  ;;  %v92_v19 = vld [vmem:[%s2123_s0 + $0xa8] sm:$0xff] }
  0xdf   :  { %1181 = vmatmul.mubr.f32.vlgmr.msra.gmra.mxu1 %v89_v21  ;;  %1781 = vmatpush3.msra.mxu0 %v430_v22  ;;  %v447_v20 = vld [vmem:[#allocation2 + $0xb00] sm:$0xff]  ;;  %v94_v21 = vld [vmem:[%s2123_s0 + $0xb8] sm:$0xff] }
  0xe0   :  { %1816 = vmatpush3.msra.mxu1 %v462_v23  ;;  %1782 = vmatprep.subr.mxu0 %v445_v24  ;;  %v91_v22 = vld [vmem:[%s2123_s0 + $0xa0] sm:$0xff]  ;;  %v93_v23 = vld [vmem:[%s2123_s0 + $0xb0] sm:$0xff] }
  0xe1   :  { %1817 = vmatprep.subr.mxu1 %v477_v25  ;;  %1783 = vmatpush3.msra.mxu0 %v429_v26  ;;  %v1342_v24 = vld [vmem:[#allocation6 + $0x78] sm:$0xff]  ;;  %v2004_v25 = vmov 0.0   ;;  %v1341_v26 = vld [vmem:[#allocation6 + $0x70] sm:$0xff] }
  0xe2   :  { %1818 = vmatpush3.msra.mxu1 %v461_v27  ;;  %1784 = vmatprep.subr.mxu0 %v444_v28  ;;  %v1340_v27 = vld [vmem:[#allocation6 + $0x68] sm:$0xff]  ;;  %v1339_v28 = vld [vmem:[#allocation6 + $0x60] sm:$0xff] }
  0xe3   :  { %1819 = vmatprep.subr.mxu1 %v476_v29  ;;  %1785 = vmatpush3.msra.mxu0 %v428_v30  ;;  %v1338_v29 = vld [vmem:[#allocation6 + $0x58] sm:$0xff]  ;;  %v1337_v30 = vld [vmem:[#allocation6 + $0x50] sm:$0xff] }
  0xe4   :  { %1820 = vmatpush3.msra.mxu1 %v460_v31  ;;  %1786 = vmatprep.subr.mxu0 %v443_v32  ;;  %v1336_v31 = vld [vmem:[#allocation6 + $0x48] sm:$0xff]  ;;  %v1335_v32 = vld [vmem:[#allocation6 + $0x40] sm:$0xff] }
  0xe5   :  { %1821 = vmatprep.subr.mxu1 %v475_v33  ;;  %1787 = vmatpush3.msra.mxu0 %v427_v34  ;;  %v1334_v33 = vld [vmem:[#allocation6 + $0x38] sm:$0xff]  ;;  %v1333_v34 = vld [vmem:[#allocation6 + $0x30] sm:$0xff] }
  0xe6   :  { %1822 = vmatpush3.msra.mxu1 %v459_v35  ;;  %1788 = vmatprep.subr.mxu0 %v442_v36  ;;  %v1332_v35 = vld [vmem:[#allocation6 + $0x28] sm:$0xff]  ;;  %v1331_v36 = vld [vmem:[#allocation6 + $0x20] sm:$0xff] }
  0xe7   :  { %1823 = vmatprep.subr.mxu1 %v474_v37  ;;  %1789 = vmatpush3.msra.mxu0 %v426_v38  ;;  %v1330_v37 = vld [vmem:[#allocation6 + $0x18] sm:$0xff]  ;;  %v1329_v38 = vld [vmem:[#allocation6 + $0x10] sm:$0xff] }
  0xe8   :  { %1824 = vmatpush3.msra.mxu1 %v458_v39  ;;  %1790 = vmatprep.subr.mxu0 %v441_v40  ;;  %v1328_v39 = vld [vmem:[#allocation6 + $0x8] sm:$0xff]  ;;  %v1327_v40 = vld [vmem:[#allocation6] sm:$0xff] }
  0xe9   :  { %1825 = vmatprep.subr.mxu1 %v473_v41  ;;  %1791 = vmatpush3.msra.mxu0 %v425_v42 }
  0xea   :  { %1826 = vmatpush3.msra.mxu1 %v457_v43  ;;  %1792 = vmatprep.subr.mxu0 %v440_v44 }
  0xeb   :  { %1827 = vmatprep.subr.mxu1 %v472_v45  ;;  %1793 = vmatpush3.msra.mxu0 %v424_v46  ;;  %v1428_v46 = vld [vmem:[#allocation4] ss:$0 sm:$0xff] }
  0xec   :  { %1828 = vmatpush3.msra.mxu1 %v456_v47  ;;  %1794 = vmatprep.subr.mxu0 %v439_v48 }
  0xed   :  { %1829 = vmatprep.subr.mxu1 %v471_v49  ;;  %1795 = vmatpush3.msra.mxu0 %v423_v50 }
  0xee   :  { %1830 = vmatpush3.msra.mxu1 %v455_v51  ;;  %1796 = vmatprep.subr.mxu0 %v438_v52 }
  0xef   :  { %1831 = vmatprep.subr.mxu1 %v470_v53  ;;  %1797 = vmatpush3.msra.mxu0 %v422_v54 }
  0xf0   :  { %1832 = vmatpush3.msra.mxu1 %v454_v55  ;;  %1798 = vmatprep.subr.mxu0 %v437_v56 }
  0xf1   :  { %1833 = vmatprep.subr.mxu1 %v469_v57  ;;  %1799 = vmatpush3.msra.mxu0 %v421_v58 }
  0xf2   :  { %1834 = vmatpush3.msra.mxu1 %v453_v59  ;;  %1800 = vmatprep.subr.mxu0 %v436_v60 }
  0xf3   :  { %1835 = vmatprep.subr.mxu1 %v468_v61  ;;  %1801 = vmatpush3.msra.mxu0 %v420_v62 }
  0xf4   :  { %1836 = vmatpush3.msra.mxu1 %v452_v63  ;;  %1802 = vmatprep.subr.mxu0 %v435_v0 }
  0xf5   :  { %1837 = vmatprep.subr.mxu1 %v467_v1  ;;  %1803 = vmatpush3.msra.mxu0 %v419_v2 }
  0xf6   :  { %1838 = vmatpush3.msra.mxu1 %v451_v3  ;;  %1804 = vmatprep.subr.mxu0 %v434_v4 }
  0xf7   :  { %1839 = vmatprep.subr.mxu1 %v466_v5  ;;  %1805 = vmatpush3.msra.mxu0 %v418_v6 }
  0xf8   :  { %1840 = vmatpush3.msra.mxu1 %v450_v7  ;;  %1806 = vmatprep.subr.mxu0 %v433_v8 }
  0xf9   :  { %1841 = vmatprep.subr.mxu1 %v465_v9  ;;  %1807 = vmatpush3.msra.mxu0 %v417_v10 }
  0xfa   :  { %1842 = vmatpush3.msra.mxu1 %v449_v11  ;;  %1808 = vmatprep.subr.mxu0 %v432_v12 }
  0xfb   :  { %1843 = vmatprep.subr.mxu1 %v464_v13  ;;  %1809 = vmatpush3.msra.mxu0 %v416_v14 }
  0xfc   :  { %1844 = vmatpush3.msra.mxu1 %v448_v15  ;;  %1810 = vmatprep.subr.mxu0 %v431_v16 }
  0xfd   :  { %1845 = vmatprep.subr.mxu1 %v463_v17  ;;  %1811 = vmatpush3.msra.mxu0 %v415_v18 }
  0xfe   :  { %1250 = vmatprep.mubr.f32.mxu0 %v92_v19  ;;  %1846 = vmatpush3.msra.mxu1 %v447_v20 }
  0xff   :  { %1320 = vmatprep.mubr.f32.mxu1 %v94_v21  ;;  %1251 = vmatmul.mubr.f32.vlgmr.msra.gmra.mxu0 %v91_v22 }
 0x100   :  { %1321 = vmatmul.mubr.f32.vlgmr.msra.gmra.mxu1 %v93_v23  ;;  %1867 = vmatprep.subr.mxu0 %v2004_v25 }
 0x101   :  { %1868 = vmatpush3.msra.mxu0 %v1342_v24  ;;  %1899 = vmatprep.mubr.msk.f32.mxu0 %vm2005_vm0, %v2004_v25 }
 0x102   :  { %1869 = vmatprep.subr.mxu0 %v2004_v25 }
 0x103   :  { %1870 = vmatpush3.msra.mxu0 %v1341_v26 }
 0x104   :  { %1871 = vmatprep.subr.mxu0 %v2004_v25 }
 0x105   :  { %1872 = vmatpush3.msra.mxu0 %v1340_v27  ;;  %v1429_v27 = vld [vmem:[#allocation7] ss:$0 sm:$0xff] }
 0x106   :  { %1873 = vmatprep.subr.mxu0 %v2004_v25 }
 0x107   :  { %1874 = vmatpush3.msra.mxu0 %v1339_v28 }
 0x108   :  { %1875 = vmatprep.subr.mxu0 %v2004_v25 }
 0x109   :  { %1876 = vmatpush3.msra.mxu0 %v1338_v29 }
 0x10a   :  { %1877 = vmatprep.subr.mxu0 %v2004_v25 }
 0x10b   :  { %1878 = vmatpush3.msra.mxu0 %v1337_v30 }
 0x10c   :  { %1879 = vmatprep.subr.mxu0 %v2004_v25 }
 0x10d   :  { %1880 = vmatpush3.msra.mxu0 %v1336_v31 }
 0x10e   :  { %1881 = vmatprep.subr.mxu0 %v2004_v25 }
 0x10f   :  { %1882 = vmatpush3.msra.mxu0 %v1335_v32 }
 0x110   :  { %1883 = vmatprep.subr.mxu0 %v2004_v25 }
 0x111   :  { %1884 = vmatpush3.msra.mxu0 %v1334_v33 }
 0x112   :  { %1885 = vmatprep.subr.mxu0 %v2004_v25 }
 0x113   :  { %1886 = vmatpush3.msra.mxu0 %v1333_v34 }
 0x114   :  { %1887 = vmatprep.subr.mxu0 %v2004_v25 }
 0x115   :  { %1888 = vmatpush3.msra.mxu0 %v1332_v35  ;;  %v1462_v41 = vpop.f32.mrf.mxu0 }
 0x116   :  { %1889 = vmatprep.subr.mxu0 %v2004_v25 }
 0x117   :  { %1890 = vmatpush3.msra.mxu0 %v1331_v36  ;;  %v1497_v42 = vpop.f32.mrf.mxu1  ;;  %v1463_v43 = vpop.f32.mrf.mxu0 }
 0x118   :  { %1891 = vmatprep.subr.mxu0 %v2004_v25  ;;  %v1464_v45 = vadd.f32 %v1463_v43, %v1462_v41 }
 0x119   :  { %1892 = vmatpush3.msra.mxu0 %v1330_v37  ;;  %v1498_v47 = vpop.f32.mrf.mxu1 }
 0x11a   :  { %1893 = vmatprep.subr.mxu0 %v2004_v25  ;;  %v553_v50 = vadd.f32 %v1464_v45, %v1428_v46  ;;  %v1499_v51 = vadd.f32 %v1498_v47, %v1497_v42 }
 0x11b   :  { %1894 = vmatpush3.msra.mxu0 %v1329_v38 }
 0x11c   :  { %1895 = vmatprep.subr.mxu0 %v2004_v25  ;;  %v623_v55 = vadd.f32 %v1499_v51, %v553_v50 }
 0x11d   :  { %1896 = vmatpush3.msra.mxu0 %v1328_v39 }
 0x11e   :  { %1897 = vmatprep.subr.mxu0 %v2004_v25 }
 0x11f   :  { %1898 = vmatpush3.msra.mxu0 %v1327_v40 }
 0x137   :  { %v1532_v44 = vpop.f32.mrf.mxu0 }
 0x139   :  { %v1567_v48 = vpop.f32.mrf.mxu1  ;;  %v1533_v49 = vpop.f32.mrf.mxu0 }
 0x13a   :  { %v1534_v53 = vadd.f32 %v1533_v49, %v1532_v44 }
 0x13b   :  { %v1568_v54 = vpop.f32.mrf.mxu1 }
 0x13c   :  { %v693_v58 = vadd.f32 %v1534_v53, %v623_v55  ;;  %v1569_v59 = vadd.f32 %v1568_v54, %v1567_v48 }
 0x13e   :  { %v763_v63 = vadd.f32 %v1569_v59, %v693_v58 }
 0x159   :  { %v1602_v52 = vpop.f32.mrf.mxu0 }
 0x15b   :  { %v1637_v56 = vpop.f32.mrf.mxu1  ;;  %v1603_v57 = vpop.f32.mrf.mxu0 }
 0x15c   :  { %v1604_v61 = vadd.f32 %v1603_v57, %v1602_v52 }
 0x15d   :  { %v1638_v62 = vpop.f32.mrf.mxu1 }
 0x15e   :  { %v833_v2 = vadd.f32 %v1604_v61, %v763_v63  ;;  %v1639_v3 = vadd.f32 %v1638_v62, %v1637_v56 }
 0x160   :  { %v903_v7 = vadd.f32 %v1639_v3, %v833_v2 }
 0x17b   :  { %v1672_v60 = vpop.f32.mrf.mxu0 }
 0x17d   :  { %v1707_v0 = vpop.f32.mrf.mxu1  ;;  %v1673_v1 = vpop.f32.mrf.mxu0 }
 0x17e   :  { %v1674_v5 = vadd.f32 %v1673_v1, %v1672_v60 }
 0x17f   :  { %v1708_v6 = vpop.f32.mrf.mxu1 }
 0x180   :  { %v973_v10 = vadd.f32 %v1674_v5, %v903_v7  ;;  %v1709_v11 = vadd.f32 %v1708_v6, %v1707_v0 }
 0x182   :  { %v1043_v14 = vadd.f32 %v1709_v11, %v973_v10 }
 0x19d   :  { %v1742_v4 = vpop.f32.mrf.mxu0 }
 0x19f   :  { %v1777_v8 = vpop.f32.mrf.mxu1  ;;  %v1743_v9 = vpop.f32.mrf.mxu0 }
 0x1a0   :  { %v1744_v12 = vadd.f32 %v1743_v9, %v1742_v4 }
 0x1a1   :  { %v1778_v13 = vpop.f32.mrf.mxu1 }
 0x1a2   :  { %v1113_v15 = vadd.f32 %v1744_v12, %v1043_v14  ;;  %v1779_v16 = vadd.f32 %v1778_v13, %v1777_v8 }
 0x1a4   :  { %v1183_v21 = vadd.f32 %v1779_v16, %v1113_v15 }
 0x1bf   :  { %v1812_v17 = vpop.f32.mrf.mxu0 }
 0x1c0   :  { %v1847_v18 = vpop.f32.mrf.mxu1 }
 0x1c1   :  { %v1813_v19 = vpop.f32.mrf.mxu0 }
 0x1c2   :  { %v1848_v20 = vpop.f32.mrf.mxu1  ;;  %v1814_v22 = vadd.f32 %v1813_v19, %v1812_v17 }
 0x1c3   :  { %v1849_v24 = vadd.f32 %v1848_v20, %v1847_v18 }
 0x1c4   :  { %v1253_v23 = vadd.f32 %v1814_v22, %v1183_v21 }
 0x1c6   :  { %v1323_v25 = vadd.f32 %v1849_v24, %v1253_v23 }
 0x1c8   :  { %1910 = vtanh.f32 %v1323_v25 }
 0x1d5   :  { %v1911_v26 = vpop.eup %1910 }
 0x1d6   :  { %1900 = vmatmul.mubr.f32.vlgmr.msra.gmra.mxu0 %v1911_v26 }
 0x296   :  { %v1416_v28 = vpop.f32.mrf.mxu0 }
 0x297   :  { %v1417_v29 = vadd.f32 %v1429_v27, %v1416_v28 }
 0x298   :  { %v1901_v30 = vpop.f32.mrf.mxu0 }
 0x299   :  { %1420 = vst [vmem:[%s2128_s5] sm:$0xff] %v1417_v29 }
 0x29a   :  { %1425 = vsyncpa [#allocation3], 1 }
 0x29b   :  { %1426 = vsyncpa [#allocation5], 1 }
 0x29c   :  { %1427 = vsyncpa [#allocation8], 1 }

</bundles_post_ra>
